<compile_context>
chip_gen: v5e
topology: v5e:2x2
jax: 0.10.0
libtpu: 0.0.40
codegen_flags: <defaults>
</compile_context>

<pallas_src>
import functools

import jax
import jax.numpy as jnp
import numpy as np
from jax.experimental import pallas as pl
from jax.experimental.pallas import tpu as pltpu


# ------------------------------------------------------------------
# Mish
# ------------------------------------------------------------------
def _mish_fast(x):
    # Mish(x) = x*tanh(softplus(x)) = x*(e^2x + 2 e^x)/(e^2x + 2 e^x + 2)
    # -> one exp instead of ~3 transcendentals.  Clamp so e^2x cannot
    #    overflow; for x >= 20 the ratio is exactly 1.0 in f32 anyway.
    # Exact divide kept (approx reciprocal would stack ~2^-12 relative error
    # on top and break the 1e-4 check against the f32 reference).
    e = jnp.exp(jnp.minimum(x, 20.0))
    n = e * (e + 2.0)
    return x * (n / (n + 2.0))


def _mish_ref(x):
    return x * jnp.tanh(jax.nn.softplus(x))


# ------------------------------------------------------------------
# Fused GSConv kernel
# ------------------------------------------------------------------
def _gsconv_kernel(x_ref, w1_ref, w2_ref, b_ref, m_ref, o_ref, *, W, pad):
    # x_ref : (1, C1, HW)   flattened-spatial input slab (lane axis = HW)
    # w1_ref: (TC, C1)      1x1-conv weights, BN scale pre-folded
    # w2_ref: (TC, 25)      depthwise 5x5 taps (t = di*5 + dj), BN scale folded
    # b_ref : (TC, 2)       [:,0]=cv1 bias, [:,1]=cv2 bias (folded BN betas)
    # m_ref : (4, HW)       horizontal-wrap masks for dj in {0,1,3,4}
    # o_ref : (1, 2*TC, HW) interleaved output rows: 2i = x1[i], 2i+1 = dw[i]
    HW = x_ref.shape[2]
    TC = w1_ref.shape[0]
    b = b_ref[...]                                             # (TC, 2)

    # ---- 1x1 conv (+ folded BN bias + Mish): (TC,C1)@(C1,HW), lane-dense ---
    x0 = x_ref[0]                                              # (C1, HW)
    x1 = jnp.dot(w1_ref[...], x0, preferred_element_type=jnp.float32)
    x1 = _mish_fast(x1 + b[:, 0:1])                            # (TC, HW)

    # ---- depthwise 5x5, pad=2, computed on the flat HW axis --------------
    # Vertical out-of-range taps land in the zero extension (pad >= 2W+2);
    # only the horizontal wrap needs masking, once per dj column.
    zpad = jnp.zeros((TC, pad), jnp.float32)
    xext = jnp.concatenate([zpad, x1, zpad], axis=1)           # (TC, HW+2*pad)
    w2 = w2_ref[...]                                           # (TC, 25)
    acc = jnp.zeros((TC, HW), jnp.float32)
    for dj in range(5):
        acc_dj = jnp.zeros((TC, HW), jnp.float32)
        for di in range(5):
            t = di * 5 + dj
            off = (di - 2) * W + (dj - 2)
            shifted = xext[:, pad + off: pad + off + HW]       # (TC, HW)
            acc_dj = acc_dj + shifted * w2[:, t:t + 1]
        if dj != 2:
            mi = dj if dj < 2 else dj - 1
            acc_dj = acc_dj * m_ref[mi]                        # (HW,) broadcast
        acc = acc + acc_dj
    x2 = _mish_fast(acc + b[:, 1:2])                           # (TC, HW)

    # ---- fused channel shuffle: one dense (2*TC, HW) store ----------------
    # row 2i = x1[i], row 2i+1 = dw[i]  (exact PyTorch shuffle order)
    inter = jnp.stack([x1, x2], axis=1).reshape(2 * TC, HW)
    o_ref[0] = inter.astype(o_ref.dtype)


def _pick_channel_tile(c):
    # Output-channel tile = MXU M dimension; take as many channels as possible
    # (<= 256) per step, falling back to divisors for very large c.
    if c <= 256:
        return c
    for cand in (256, 128, 64, 32, 16, 8):
        if c % cand == 0:
            return cand
    return c


def _col_masks(H, W):
    # Horizontal-wrap validity masks, one per dj in {0, 1, 3, 4} (dj==2 needs
    # no mask).  mask[p] = 1 iff dest column w=p%W has 0 <= w+dj-2 < W.
    w = np.arange(H * W) % W
    rows = []
    for dj in (0, 1, 3, 4):
        valid = (w + dj - 2 >= 0) & (w + dj - 2 < W)
        rows.append(valid.astype(np.float32))
    return jnp.asarray(np.stack(rows, axis=0))                 # (4, HW)


# ------------------------------------------------------------------
# GSConv forward (wrapper).  x is NCHW, exactly like the PyTorch module.
# ------------------------------------------------------------------
def gsconv_forward(x_nchw, params):
    N, C1, H, W = x_nchw.shape
    c_ = params["w1"].shape[0]
    HW = H * W
    TC = _pick_channel_tile(c_)
    G = c_ // TC
    pad = ((2 * W + 2 + 127) // 128) * 128        # lane zero extension >= 2W+2

    xf = x_nchw.reshape(N, C1, HW)                # free reshape, channel-major
    masks = _col_masks(H, W)

    # Fold BN scales into the conv weights (one-time, tiny tensors); keep only
    # the bias add + Mish in the kernel.  Biases packed into one (c_, 2) array.
    w1f = params["w1"] * params["s1"][:, None]                 # (c_, C1)
    w2f = params["w2"] * params["s2"][:, None]                 # (c_, 25)
    bias = jnp.stack([params["b1"], params["b2"]], axis=1)     # (c_, 2)

    kernel = functools.partial(_gsconv_kernel, W=W, pad=pad)

    # Advisory scheduling hints + explicit (v7x-safe) VMEM cap.
    flops = 2 * N * HW * c_ * (C1 + 25) + 12 * N * HW * c_
    transcendentals = 2 * N * HW * c_
    bytes_accessed = 4 * (N * C1 * HW + 2 * N * c_ * HW + 4 * HW
                          + c_ * (C1 + 25 + 2))
    block_bytes = 4 * (HW * (C1 + 2 * TC + 4) + TC * (C1 + 25 + 2)
                       + TC * (5 * HW + 2 * pad))
    vmem_limit = int(min(32 * 1024 * 1024, max(16 * 1024 * 1024, 8 * block_bytes)))

    out = pl.pallas_call(
        kernel,
        out_shape=jax.ShapeDtypeStruct((N, 2 * c_, HW), jnp.float32),
        grid=(N, G),
        in_specs=[
            pl.BlockSpec((1, C1, HW), lambda n, g: (n, 0, 0)),
            pl.BlockSpec((TC, C1), lambda n, g: (g, 0)),
            pl.BlockSpec((TC, 25), lambda n, g: (g, 0)),
            pl.BlockSpec((TC, 2), lambda n, g: (g, 0)),
            pl.BlockSpec((4, HW), lambda n, g: (0, 0)),
        ],
        out_specs=pl.BlockSpec((1, 2 * TC, HW), lambda n, g: (n, g, 0)),
        compiler_params=pltpu.CompilerParams(
            dimension_semantics=("parallel", "parallel"),
            vmem_limit_bytes=vmem_limit),
        cost_estimate=pl.CostEstimate(flops=flops,
                                      transcendentals=transcendentals,
                                      bytes_accessed=bytes_accessed),
    )(xf, w1f, w2f, bias, masks)

    # (N, 2*c_, HW) -> (N, 2*c_, H, W): free reshape (shuffle already done).
    return out.reshape(N, 2 * c_, H, W)


# ------------------------------------------------------------------
# Pure-JAX reference (correctness check only) — mirrors the PyTorch module.
# ------------------------------------------------------------------
def gsconv_reference(x_nchw, params):
    c_ = params["w1"].shape[0]
    hi = jax.lax.Precision.HIGHEST
    s1 = params["s1"][None, :, None, None]
    b1 = params["b1"][None, :, None, None]
    s2 = params["s2"][None, :, None, None]
    b2 = params["b2"][None, :, None, None]

    # cv1: 1x1 conv + BN + Mish
    w1 = params["w1"][:, :, None, None]                      # OIHW (c_, c1, 1, 1)
    x1 = jax.lax.conv_general_dilated(
        x_nchw, w1, window_strides=(1, 1), padding="VALID",
        dimension_numbers=("NCHW", "OIHW", "NCHW"), precision=hi)
    x1 = _mish_ref(x1 * s1 + b1)

    # cv2: depthwise 5x5 conv + BN + Mish
    w2 = params["w2"].reshape(c_, 1, 5, 5)                   # OIHW, groups=c_
    xd = jax.lax.conv_general_dilated(
        x1, w2, window_strides=(1, 1), padding=((2, 2), (2, 2)),
        dimension_numbers=("NCHW", "OIHW", "NCHW"),
        feature_group_count=c_, precision=hi)
    xd = _mish_ref(xd * s2 + b2)

    # exact PyTorch shuffle: cat -> (b,2,c/2,h,w) -> permute -> reshape
    x2 = jnp.concatenate([x1, xd], axis=1)
    b, c, h, w = x2.shape
    y = x2.reshape(b, 2, c // 2, h, w).transpose(0, 2, 1, 3, 4)
    return y.reshape(b, c, h, w)


def make_params(key, c1, c2):
    c_ = c2 // 2
    ks = jax.random.split(key, 10)
    eps = 1e-5

    def bn_fold(kg, kb, km, kv, c):
        gamma = 1.0 + 0.1 * jax.random.normal(kg, (c,), jnp.float32)
        beta = 0.1 * jax.random.normal(kb, (c,), jnp.float32)
        mean = 0.1 * jax.random.normal(km, (c,), jnp.float32)
        var = 1.0 + 0.1 * jnp.abs(jax.random.normal(kv, (c,), jnp.float32))
        scale = gamma / jnp.sqrt(var + eps)
        return scale, beta - mean * scale

    w1 = 0.2 * jax.random.normal(ks[0], (c_, c1), jnp.float32)    # 1x1 conv (Cout, Cin)
    s1, b1 = bn_fold(ks[1], ks[2], ks[3], ks[4], c_)
    w2 = 0.2 * jax.random.normal(ks[5], (c_, 25), jnp.float32)    # depthwise 5x5 taps
    s2, b2 = bn_fold(ks[6], ks[7], ks[8], ks[9], c_)
    return {"w1": w1, "s1": s1, "b1": b1, "w2": w2, "s2": s2, "b2": b2}


if __name__ == "__main__":
    key = jax.random.PRNGKey(0)
    k_param, k_x = jax.random.split(key)

    N, C1, C2, H, W = 2, 4, 8, 16, 16            # GSConv(c1=4, c2=8)
    params = make_params(k_param, C1, C2)
    x = jax.random.normal(k_x, (N, C1, H, W), jnp.float32)   # NCHW like PyTorch

    out = jax.block_until_ready(gsconv_forward(x, params))
    ref = jax.block_until_ready(gsconv_reference(x, params))

    assert out.shape == (N, C2, H, W), out.shape
    assert jnp.allclose(out, ref, atol=1e-4, rtol=1e-4), \
        float(jnp.max(jnp.abs(out - ref)))

    print("KERNEL_OK")
</pallas_src>

<mosaic_0001>
module attributes {stable_mosaic.version = 11 : i64} {
  func.func @_gsconv_kernel(%arg0: i32, %arg1: i32, %arg2: memref<1x4x256xf32, #tpu.memory_space<vmem>>, %arg3: memref<4x4xf32, #tpu.memory_space<vmem>>, %arg4: memref<4x25xf32, #tpu.memory_space<vmem>>, %arg5: memref<4x2xf32, #tpu.memory_space<vmem>>, %arg6: memref<4x256xf32, #tpu.memory_space<vmem>>, %arg7: memref<1x8x256xf32, #tpu.memory_space<vmem>>) attributes {dimension_semantics = [#tpu.dimension_semantics<parallel>, #tpu.dimension_semantics<parallel>], iteration_bounds = array<i64: 2, 1>, scalar_prefetch = 0 : i64, scratch_operands = 0 : i64, tpu.core_type = #tpu.core_type<tc>, window_params = [{transform_indices = @transform_0, window_bounds = array<i64: 1, 4, 256>}, {transform_indices = @transform_1, window_bounds = array<i64: 4, 4>}, {transform_indices = @transform_2, window_bounds = array<i64: 4, 25>}, {transform_indices = @transform_3, window_bounds = array<i64: 4, 2>}, {pipeline_mode = #tpu.pipeline_mode<synchronous>, transform_indices = @transform_4, window_bounds = array<i64: 4, 256>}, {transform_indices = @transform_5, window_bounds = array<i64: 1, 8, 256>}]} {
    %c0 = arith.constant 0 : index
    %c0_0 = arith.constant 0 : index
    %0 = vector.load %arg5[%c0, %c0_0] : memref<4x2xf32, #tpu.memory_space<vmem>>, vector<4x2xf32>
    %c0_1 = arith.constant 0 : index
    %c0_2 = arith.constant 0 : index
    %c0_3 = arith.constant 0 : index
    %1 = vector.load %arg2[%c0_1, %c0_2, %c0_3] : memref<1x4x256xf32, #tpu.memory_space<vmem>>, vector<1x4x256xf32>
    %2 = vector.shape_cast %1 : vector<1x4x256xf32> to vector<4x256xf32>
    %c0_4 = arith.constant 0 : index
    %c0_5 = arith.constant 0 : index
    %3 = vector.load %arg3[%c0_4, %c0_5] : memref<4x4xf32, #tpu.memory_space<vmem>>, vector<4x4xf32>
    %cst = arith.constant dense<0.000000e+00> : vector<4x256xf32>
    %4 = tpu.matmul %3, %2, %cst {dimension_numbers = #tpu.dot_dimension_numbers<[1], [0], [0], [1], [0, 0, 1, 1], [], []>} : vector<4x4xf32>, vector<4x256xf32>, vector<4x256xf32> -> vector<4x256xf32>
    %5 = vector.extract_strided_slice %0 {offsets = [0, 0], sizes = [4, 1], strides = [1, 1]} : vector<4x2xf32> to vector<4x1xf32>
    %6 = vector.broadcast %5 : vector<4x1xf32> to vector<4x256xf32>
    %7 = arith.addf %4, %6 : vector<4x256xf32>
    %cst_6 = arith.constant 2.000000e+01 : f32
    %8 = vector.broadcast %cst_6 : f32 to vector<4x256xf32>
    %9 = arith.minimumf %7, %8 : vector<4x256xf32>
    %10 = math.exp %9 : vector<4x256xf32>
    %cst_7 = arith.constant 2.000000e+00 : f32
    %11 = vector.broadcast %cst_7 : f32 to vector<4x256xf32>
    %12 = arith.addf %10, %11 : vector<4x256xf32>
    %13 = arith.mulf %10, %12 : vector<4x256xf32>
    %cst_8 = arith.constant 2.000000e+00 : f32
    %14 = vector.broadcast %cst_8 : f32 to vector<4x256xf32>
    %15 = arith.addf %13, %14 : vector<4x256xf32>
    %16 = arith.divf %13, %15 : vector<4x256xf32>
    %17 = arith.mulf %7, %16 : vector<4x256xf32>
    %cst_9 = arith.constant 0.000000e+00 : f32
    %18 = vector.broadcast %cst_9 : f32 to vector<4x128xf32>
    %19 = tpu.concatenate %18, %17, %18 in 1 : vector<4x128xf32>, vector<4x256xf32>, vector<4x128xf32> -> vector<4x512xf32>
    %c0_10 = arith.constant 0 : index
    %c0_11 = arith.constant 0 : index
    %20 = vector.load %arg4[%c0_10, %c0_11] : memref<4x25xf32, #tpu.memory_space<vmem>>, vector<4x25xf32>
    %cst_12 = arith.constant 0.000000e+00 : f32
    %21 = vector.broadcast %cst_12 : f32 to vector<4x256xf32>
    %cst_13 = arith.constant 0.000000e+00 : f32
    %22 = vector.broadcast %cst_13 : f32 to vector<4x256xf32>
    %23 = vector.extract_strided_slice %19 {offsets = [0, 94], sizes = [4, 256], strides = [1, 1]} : vector<4x512xf32> to vector<4x256xf32>
    %24 = vector.extract_strided_slice %20 {offsets = [0, 0], sizes = [4, 1], strides = [1, 1]} : vector<4x25xf32> to vector<4x1xf32>
    %25 = vector.broadcast %24 : vector<4x1xf32> to vector<4x256xf32>
    %26 = arith.mulf %23, %25 : vector<4x256xf32>
    %27 = arith.addf %22, %26 : vector<4x256xf32>
    %28 = vector.extract_strided_slice %19 {offsets = [0, 110], sizes = [4, 256], strides = [1, 1]} : vector<4x512xf32> to vector<4x256xf32>
    %29 = vector.extract_strided_slice %20 {offsets = [0, 5], sizes = [4, 1], strides = [1, 1]} : vector<4x25xf32> to vector<4x1xf32>
    %30 = vector.broadcast %29 : vector<4x1xf32> to vector<4x256xf32>
    %31 = arith.mulf %28, %30 : vector<4x256xf32>
    %32 = arith.addf %27, %31 : vector<4x256xf32>
    %33 = vector.extract_strided_slice %19 {offsets = [0, 126], sizes = [4, 256], strides = [1, 1]} : vector<4x512xf32> to vector<4x256xf32>
    %34 = vector.extract_strided_slice %20 {offsets = [0, 10], sizes = [4, 1], strides = [1, 1]} : vector<4x25xf32> to vector<4x1xf32>
    %35 = vector.broadcast %34 : vector<4x1xf32> to vector<4x256xf32>
    %36 = arith.mulf %33, %35 : vector<4x256xf32>
    %37 = arith.addf %32, %36 : vector<4x256xf32>
    %38 = vector.extract_strided_slice %19 {offsets = [0, 142], sizes = [4, 256], strides = [1, 1]} : vector<4x512xf32> to vector<4x256xf32>
    %39 = vector.extract_strided_slice %20 {offsets = [0, 15], sizes = [4, 1], strides = [1, 1]} : vector<4x25xf32> to vector<4x1xf32>
    %40 = vector.broadcast %39 : vector<4x1xf32> to vector<4x256xf32>
    %41 = arith.mulf %38, %40 : vector<4x256xf32>
    %42 = arith.addf %37, %41 : vector<4x256xf32>
    %43 = vector.extract_strided_slice %19 {offsets = [0, 158], sizes = [4, 256], strides = [1, 1]} : vector<4x512xf32> to vector<4x256xf32>
    %44 = vector.extract_strided_slice %20 {offsets = [0, 20], sizes = [4, 1], strides = [1, 1]} : vector<4x25xf32> to vector<4x1xf32>
    %45 = vector.broadcast %44 : vector<4x1xf32> to vector<4x256xf32>
    %46 = arith.mulf %43, %45 : vector<4x256xf32>
    %47 = arith.addf %42, %46 : vector<4x256xf32>
    %c0_14 = arith.constant 0 : index
    %c0_15 = arith.constant 0 : index
    %48 = vector.load %arg6[%c0_14, %c0_15] : memref<4x256xf32, #tpu.memory_space<vmem>>, vector<1x256xf32>
    %49 = vector.shape_cast %48 : vector<1x256xf32> to vector<256xf32>
    %50 = vector.shape_cast %49 : vector<256xf32> to vector<1x256xf32>
    %51 = vector.broadcast %50 : vector<1x256xf32> to vector<4x256xf32>
    %52 = arith.mulf %47, %51 : vector<4x256xf32>
    %53 = arith.addf %21, %52 : vector<4x256xf32>
    %cst_16 = arith.constant 0.000000e+00 : f32
    %54 = vector.broadcast %cst_16 : f32 to vector<4x256xf32>
    %55 = vector.extract_strided_slice %19 {offsets = [0, 95], sizes = [4, 256], strides = [1, 1]} : vector<4x512xf32> to vector<4x256xf32>
    %56 = vector.extract_strided_slice %20 {offsets = [0, 1], sizes = [4, 1], strides = [1, 1]} : vector<4x25xf32> to vector<4x1xf32>
    %57 = vector.broadcast %56 : vector<4x1xf32> to vector<4x256xf32>
    %58 = arith.mulf %55, %57 : vector<4x256xf32>
    %59 = arith.addf %54, %58 : vector<4x256xf32>
    %60 = vector.extract_strided_slice %19 {offsets = [0, 111], sizes = [4, 256], strides = [1, 1]} : vector<4x512xf32> to vector<4x256xf32>
    %61 = vector.extract_strided_slice %20 {offsets = [0, 6], sizes = [4, 1], strides = [1, 1]} : vector<4x25xf32> to vector<4x1xf32>
    %62 = vector.broadcast %61 : vector<4x1xf32> to vector<4x256xf32>
    %63 = arith.mulf %60, %62 : vector<4x256xf32>
    %64 = arith.addf %59, %63 : vector<4x256xf32>
    %65 = vector.extract_strided_slice %19 {offsets = [0, 127], sizes = [4, 256], strides = [1, 1]} : vector<4x512xf32> to vector<4x256xf32>
    %66 = vector.extract_strided_slice %20 {offsets = [0, 11], sizes = [4, 1], strides = [1, 1]} : vector<4x25xf32> to vector<4x1xf32>
    %67 = vector.broadcast %66 : vector<4x1xf32> to vector<4x256xf32>
    %68 = arith.mulf %65, %67 : vector<4x256xf32>
    %69 = arith.addf %64, %68 : vector<4x256xf32>
    %70 = vector.extract_strided_slice %19 {offsets = [0, 143], sizes = [4, 256], strides = [1, 1]} : vector<4x512xf32> to vector<4x256xf32>
    %71 = vector.extract_strided_slice %20 {offsets = [0, 16], sizes = [4, 1], strides = [1, 1]} : vector<4x25xf32> to vector<4x1xf32>
    %72 = vector.broadcast %71 : vector<4x1xf32> to vector<4x256xf32>
    %73 = arith.mulf %70, %72 : vector<4x256xf32>
    %74 = arith.addf %69, %73 : vector<4x256xf32>
    %75 = vector.extract_strided_slice %19 {offsets = [0, 159], sizes = [4, 256], strides = [1, 1]} : vector<4x512xf32> to vector<4x256xf32>
    %76 = vector.extract_strided_slice %20 {offsets = [0, 21], sizes = [4, 1], strides = [1, 1]} : vector<4x25xf32> to vector<4x1xf32>
    %77 = vector.broadcast %76 : vector<4x1xf32> to vector<4x256xf32>
    %78 = arith.mulf %75, %77 : vector<4x256xf32>
    %79 = arith.addf %74, %78 : vector<4x256xf32>
    %c1 = arith.constant 1 : index
    %c0_17 = arith.constant 0 : index
    %80 = vector.load %arg6[%c1, %c0_17] : memref<4x256xf32, #tpu.memory_space<vmem>>, vector<1x256xf32>
    %81 = vector.shape_cast %80 : vector<1x256xf32> to vector<256xf32>
    %82 = vector.shape_cast %81 : vector<256xf32> to vector<1x256xf32>
    %83 = vector.broadcast %82 : vector<1x256xf32> to vector<4x256xf32>
    %84 = arith.mulf %79, %83 : vector<4x256xf32>
    %85 = arith.addf %53, %84 : vector<4x256xf32>
    %cst_18 = arith.constant 0.000000e+00 : f32
    %86 = vector.broadcast %cst_18 : f32 to vector<4x256xf32>
    %87 = vector.extract_strided_slice %19 {offsets = [0, 96], sizes = [4, 256], strides = [1, 1]} : vector<4x512xf32> to vector<4x256xf32>
    %88 = vector.extract_strided_slice %20 {offsets = [0, 2], sizes = [4, 1], strides = [1, 1]} : vector<4x25xf32> to vector<4x1xf32>
    %89 = vector.broadcast %88 : vector<4x1xf32> to vector<4x256xf32>
    %90 = arith.mulf %87, %89 : vector<4x256xf32>
    %91 = arith.addf %86, %90 : vector<4x256xf32>
    %92 = vector.extract_strided_slice %19 {offsets = [0, 112], sizes = [4, 256], strides = [1, 1]} : vector<4x512xf32> to vector<4x256xf32>
    %93 = vector.extract_strided_slice %20 {offsets = [0, 7], sizes = [4, 1], strides = [1, 1]} : vector<4x25xf32> to vector<4x1xf32>
    %94 = vector.broadcast %93 : vector<4x1xf32> to vector<4x256xf32>
    %95 = arith.mulf %92, %94 : vector<4x256xf32>
    %96 = arith.addf %91, %95 : vector<4x256xf32>
    %97 = vector.extract_strided_slice %19 {offsets = [0, 128], sizes = [4, 256], strides = [1, 1]} : vector<4x512xf32> to vector<4x256xf32>
    %98 = vector.extract_strided_slice %20 {offsets = [0, 12], sizes = [4, 1], strides = [1, 1]} : vector<4x25xf32> to vector<4x1xf32>
    %99 = vector.broadcast %98 : vector<4x1xf32> to vector<4x256xf32>
    %100 = arith.mulf %97, %99 : vector<4x256xf32>
    %101 = arith.addf %96, %100 : vector<4x256xf32>
    %102 = vector.extract_strided_slice %19 {offsets = [0, 144], sizes = [4, 256], strides = [1, 1]} : vector<4x512xf32> to vector<4x256xf32>
    %103 = vector.extract_strided_slice %20 {offsets = [0, 17], sizes = [4, 1], strides = [1, 1]} : vector<4x25xf32> to vector<4x1xf32>
    %104 = vector.broadcast %103 : vector<4x1xf32> to vector<4x256xf32>
    %105 = arith.mulf %102, %104 : vector<4x256xf32>
    %106 = arith.addf %101, %105 : vector<4x256xf32>
    %107 = vector.extract_strided_slice %19 {offsets = [0, 160], sizes = [4, 256], strides = [1, 1]} : vector<4x512xf32> to vector<4x256xf32>
    %108 = vector.extract_strided_slice %20 {offsets = [0, 22], sizes = [4, 1], strides = [1, 1]} : vector<4x25xf32> to vector<4x1xf32>
    %109 = vector.broadcast %108 : vector<4x1xf32> to vector<4x256xf32>
    %110 = arith.mulf %107, %109 : vector<4x256xf32>
    %111 = arith.addf %106, %110 : vector<4x256xf32>
    %112 = arith.addf %85, %111 : vector<4x256xf32>
    %cst_19 = arith.constant 0.000000e+00 : f32
    %113 = vector.broadcast %cst_19 : f32 to vector<4x256xf32>
    %114 = vector.extract_strided_slice %19 {offsets = [0, 97], sizes = [4, 256], strides = [1, 1]} : vector<4x512xf32> to vector<4x256xf32>
    %115 = vector.extract_strided_slice %20 {offsets = [0, 3], sizes = [4, 1], strides = [1, 1]} : vector<4x25xf32> to vector<4x1xf32>
    %116 = vector.broadcast %115 : vector<4x1xf32> to vector<4x256xf32>
    %117 = arith.mulf %114, %116 : vector<4x256xf32>
    %118 = arith.addf %113, %117 : vector<4x256xf32>
    %119 = vector.extract_strided_slice %19 {offsets = [0, 113], sizes = [4, 256], strides = [1, 1]} : vector<4x512xf32> to vector<4x256xf32>
    %120 = vector.extract_strided_slice %20 {offsets = [0, 8], sizes = [4, 1], strides = [1, 1]} : vector<4x25xf32> to vector<4x1xf32>
    %121 = vector.broadcast %120 : vector<4x1xf32> to vector<4x256xf32>
    %122 = arith.mulf %119, %121 : vector<4x256xf32>
    %123 = arith.addf %118, %122 : vector<4x256xf32>
    %124 = vector.extract_strided_slice %19 {offsets = [0, 129], sizes = [4, 256], strides = [1, 1]} : vector<4x512xf32> to vector<4x256xf32>
    %125 = vector.extract_strided_slice %20 {offsets = [0, 13], sizes = [4, 1], strides = [1, 1]} : vector<4x25xf32> to vector<4x1xf32>
    %126 = vector.broadcast %125 : vector<4x1xf32> to vector<4x256xf32>
    %127 = arith.mulf %124, %126 : vector<4x256xf32>
    %128 = arith.addf %123, %127 : vector<4x256xf32>
    %129 = vector.extract_strided_slice %19 {offsets = [0, 145], sizes = [4, 256], strides = [1, 1]} : vector<4x512xf32> to vector<4x256xf32>
    %130 = vector.extract_strided_slice %20 {offsets = [0, 18], sizes = [4, 1], strides = [1, 1]} : vector<4x25xf32> to vector<4x1xf32>
    %131 = vector.broadcast %130 : vector<4x1xf32> to vector<4x256xf32>
    %132 = arith.mulf %129, %131 : vector<4x256xf32>
    %133 = arith.addf %128, %132 : vector<4x256xf32>
    %134 = vector.extract_strided_slice %19 {offsets = [0, 161], sizes = [4, 256], strides = [1, 1]} : vector<4x512xf32> to vector<4x256xf32>
    %135 = vector.extract_strided_slice %20 {offsets = [0, 23], sizes = [4, 1], strides = [1, 1]} : vector<4x25xf32> to vector<4x1xf32>
    %136 = vector.broadcast %135 : vector<4x1xf32> to vector<4x256xf32>
    %137 = arith.mulf %134, %136 : vector<4x256xf32>
    %138 = arith.addf %133, %137 : vector<4x256xf32>
    %c2 = arith.constant 2 : index
    %c0_20 = arith.constant 0 : index
    %139 = vector.load %arg6[%c2, %c0_20] : memref<4x256xf32, #tpu.memory_space<vmem>>, vector<1x256xf32>
    %140 = vector.shape_cast %139 : vector<1x256xf32> to vector<256xf32>
    %141 = vector.shape_cast %140 : vector<256xf32> to vector<1x256xf32>
    %142 = vector.broadcast %141 : vector<1x256xf32> to vector<4x256xf32>
    %143 = arith.mulf %138, %142 : vector<4x256xf32>
    %144 = arith.addf %112, %143 : vector<4x256xf32>
    %cst_21 = arith.constant 0.000000e+00 : f32
    %145 = vector.broadcast %cst_21 : f32 to vector<4x256xf32>
    %146 = vector.extract_strided_slice %19 {offsets = [0, 98], sizes = [4, 256], strides = [1, 1]} : vector<4x512xf32> to vector<4x256xf32>
    %147 = vector.extract_strided_slice %20 {offsets = [0, 4], sizes = [4, 1], strides = [1, 1]} : vector<4x25xf32> to vector<4x1xf32>
    %148 = vector.broadcast %147 : vector<4x1xf32> to vector<4x256xf32>
    %149 = arith.mulf %146, %148 : vector<4x256xf32>
    %150 = arith.addf %145, %149 : vector<4x256xf32>
    %151 = vector.extract_strided_slice %19 {offsets = [0, 114], sizes = [4, 256], strides = [1, 1]} : vector<4x512xf32> to vector<4x256xf32>
    %152 = vector.extract_strided_slice %20 {offsets = [0, 9], sizes = [4, 1], strides = [1, 1]} : vector<4x25xf32> to vector<4x1xf32>
    %153 = vector.broadcast %152 : vector<4x1xf32> to vector<4x256xf32>
    %154 = arith.mulf %151, %153 : vector<4x256xf32>
    %155 = arith.addf %150, %154 : vector<4x256xf32>
    %156 = vector.extract_strided_slice %19 {offsets = [0, 130], sizes = [4, 256], strides = [1, 1]} : vector<4x512xf32> to vector<4x256xf32>
    %157 = vector.extract_strided_slice %20 {offsets = [0, 14], sizes = [4, 1], strides = [1, 1]} : vector<4x25xf32> to vector<4x1xf32>
    %158 = vector.broadcast %157 : vector<4x1xf32> to vector<4x256xf32>
    %159 = arith.mulf %156, %158 : vector<4x256xf32>
    %160 = arith.addf %155, %159 : vector<4x256xf32>
    %161 = vector.extract_strided_slice %19 {offsets = [0, 146], sizes = [4, 256], strides = [1, 1]} : vector<4x512xf32> to vector<4x256xf32>
    %162 = vector.extract_strided_slice %20 {offsets = [0, 19], sizes = [4, 1], strides = [1, 1]} : vector<4x25xf32> to vector<4x1xf32>
    %163 = vector.broadcast %162 : vector<4x1xf32> to vector<4x256xf32>
    %164 = arith.mulf %161, %163 : vector<4x256xf32>
    %165 = arith.addf %160, %164 : vector<4x256xf32>
    %166 = vector.extract_strided_slice %19 {offsets = [0, 162], sizes = [4, 256], strides = [1, 1]} : vector<4x512xf32> to vector<4x256xf32>
    %167 = vector.extract_strided_slice %20 {offsets = [0, 24], sizes = [4, 1], strides = [1, 1]} : vector<4x25xf32> to vector<4x1xf32>
    %168 = vector.broadcast %167 : vector<4x1xf32> to vector<4x256xf32>
    %169 = arith.mulf %166, %168 : vector<4x256xf32>
    %170 = arith.addf %165, %169 : vector<4x256xf32>
    %c3 = arith.constant 3 : index
    %c0_22 = arith.constant 0 : index
    %171 = vector.load %arg6[%c3, %c0_22] : memref<4x256xf32, #tpu.memory_space<vmem>>, vector<1x256xf32>
    %172 = vector.shape_cast %171 : vector<1x256xf32> to vector<256xf32>
    %173 = vector.shape_cast %172 : vector<256xf32> to vector<1x256xf32>
    %174 = vector.broadcast %173 : vector<1x256xf32> to vector<4x256xf32>
    %175 = arith.mulf %170, %174 : vector<4x256xf32>
    %176 = arith.addf %144, %175 : vector<4x256xf32>
    %177 = vector.extract_strided_slice %0 {offsets = [0, 1], sizes = [4, 1], strides = [1, 1]} : vector<4x2xf32> to vector<4x1xf32>
    %178 = vector.broadcast %177 : vector<4x1xf32> to vector<4x256xf32>
    %179 = arith.addf %176, %178 : vector<4x256xf32>
    %cst_23 = arith.constant 2.000000e+01 : f32
    %180 = vector.broadcast %cst_23 : f32 to vector<4x256xf32>
    %181 = arith.minimumf %179, %180 : vector<4x256xf32>
    %182 = math.exp %181 : vector<4x256xf32>
    %cst_24 = arith.constant 2.000000e+00 : f32
    %183 = vector.broadcast %cst_24 : f32 to vector<4x256xf32>
    %184 = arith.addf %182, %183 : vector<4x256xf32>
    %185 = arith.mulf %182, %184 : vector<4x256xf32>
    %cst_25 = arith.constant 2.000000e+00 : f32
    %186 = vector.broadcast %cst_25 : f32 to vector<4x256xf32>
    %187 = arith.addf %185, %186 : vector<4x256xf32>
    %188 = arith.divf %185, %187 : vector<4x256xf32>
    %189 = arith.mulf %179, %188 : vector<4x256xf32>
    %190 = vector.shape_cast %17 : vector<4x256xf32> to vector<4x1x256xf32>
    %191 = vector.shape_cast %189 : vector<4x256xf32> to vector<4x1x256xf32>
    %192 = tpu.concatenate %190, %191 in 1 : vector<4x1x256xf32>, vector<4x1x256xf32> -> vector<4x2x256xf32>
    %193 = vector.shape_cast %192 : vector<4x2x256xf32> to vector<8x256xf32>
    %c0_26 = arith.constant 0 : index
    %c0_27 = arith.constant 0 : index
    %c0_28 = arith.constant 0 : index
    %194 = vector.load %arg7[%c0_26, %c0_27, %c0_28] : memref<1x8x256xf32, #tpu.memory_space<vmem>>, vector<1x8x256xf32>
    %195 = vector.shape_cast %194 : vector<1x8x256xf32> to vector<8x256xf32>
    %196 = vector.shape_cast %193 : vector<8x256xf32> to vector<1x8x256xf32>
    tpu.vector_store %arg7[%c0_26, %c0_27, %c0_28], %196 {strides = array<i32>} : memref<1x8x256xf32, #tpu.memory_space<vmem>>, vector<1x8x256xf32>,
    return
  }
  func.func @transform_0(%arg0: i32, %arg1: i32) -> (i32, i32, i32) {
    %c0_i32 = arith.constant 0 : i32
    %c0_i32_0 = arith.constant 0 : i32
    %c0_i32_1 = arith.constant 0 : i32
    return %arg0, %c0_i32, %c0_i32_0 : i32, i32, i32
  }
  func.func @transform_1(%arg0: i32, %arg1: i32) -> (i32, i32) {
    %c0_i32 = arith.constant 0 : i32
    %c0_i32_0 = arith.constant 0 : i32
    return %arg1, %c0_i32 : i32, i32
  }
  func.func @transform_2(%arg0: i32, %arg1: i32) -> (i32, i32) {
    %c0_i32 = arith.constant 0 : i32
    %c0_i32_0 = arith.constant 0 : i32
    return %arg1, %c0_i32 : i32, i32
  }
  func.func @transform_3(%arg0: i32, %arg1: i32) -> (i32, i32) {
    %c0_i32 = arith.constant 0 : i32
    %c0_i32_0 = arith.constant 0 : i32
    return %arg1, %c0_i32 : i32, i32
  }
  func.func @transform_4(%arg0: i32, %arg1: i32) -> (i32, i32) {
    %c0_i32 = arith.constant 0 : i32
    %c0_i32_0 = arith.constant 0 : i32
    %c0_i32_1 = arith.constant 0 : i32
    return %c0_i32, %c0_i32_0 : i32, i32
  }
  func.func @transform_5(%arg0: i32, %arg1: i32) -> (i32, i32, i32) {
    %c0_i32 = arith.constant 0 : i32
    %c0_i32_0 = arith.constant 0 : i32
    return %arg0, %arg1, %c0_i32 : i32, i32, i32
  }
}

</mosaic_0001>

<bundles_post_ra>
// kernel: tpu_custom_call.1
= control target key start
LH: loop header
LB: loop body
LE: loop exit
PB: predicated region body
PF: predicated region fallthrough
CT: control target
= control target key end

     0   :  { %10 = vsyncpa [#allocation3], 0  ;;  %s2507_s0 = inlined_call_operand.hbm [shape: f32[2,4,256], index: 0, kind: input, shape index: {}]   ;;  %s2508_s1 = inlined_call_operand.hbm [shape: f32[4,4], index: 1, kind: input, shape index: {}]   ;;  %s2509_s2 = inlined_call_operand.hbm [shape: f32[4,25], index: 2, kind: input, shape index: {}]   ;;  %s2510_s3 = inlined_call_operand.vmem [shape: f32[4,2], index: 3, kind: input, shape index: {}]   ;;  %s2511_s4 = inlined_call_operand.vmem [shape: f32[4,256], index: 4, kind: input, shape index: {}]   ;;  %s2512_s5 = inlined_call_operand.hbm [shape: f32[2,8,256], index: 5, kind: output, shape index: {}]  }
   0x1   :  { %12 = vsyncpa [#allocation3 + $0x1], 0 }
   0x2   :  { %13 = vsyncpa [#allocation6], 0 }
   0x3   :  { %14 = vsyncpa [#allocation4], 0 }
   0x4   :  { %16 = vsyncpa [#allocation4 + $0x1], 0  ;;  %s1892_s18 = smov 0   ;;  %s1894_s19 = smov 0  }
   0x5   :  { %s1896_s20 = smov 0   ;;  %s1898_s21 = smov 0  }
   0x6   :  { %s1900_s22 = smov 0   ;;  %s1902_s23 = smov 0  }
   0x7 LB: > { %s1446_s24 = sadd.s32 4294967295, %s1820_s23   ;;  %s1447_s25 = sadd.s32 4294967294, %s1820_s23   ;;  %s1820_s23 = sphi %s1902_s23, %s22_s23   ;;  %s1816_s22 = sphi %s1900_s22, %s2522_s22   ;;  %s1812_s21 = sphi %s1898_s21, %s2521_s21   ;;  %s1808_s20 = sphi %s1896_s20, %s2520_s20   ;;  %s1804_s19 = sphi %s1894_s19, %s2519_s19   ;;  %s1800_s18 = sphi %s1892_s18, %s2518_s18  }
   0x8   : > { %p54_p0 = scmp.ne.s32.totalorder %s1804_s19, %s1800_s18  ;;  %p1926_p1 = scmp.eq.s32.totalorder %s1446_s24, 0 }
   0x9   : > { %p185_p2 = scmp.eq.s32.totalorder %s1447_s25, 1  ;;  %p1448_p4 = scmp.ge.s32.totalorder %s1820_s23, 1 }
   0xa   : > { %p1932_p3 = por %p1926_p1, %p54_p0  ;;  %p192_p6 = scmp.lt.s32.totalorder %s1820_s23, 3 }
   0xb   : > { %p1937_p5 = por %p185_p2, %p54_p0  ;;  %s206_s6 = sshll.u32 %s2508_s1, 4  ;;  %s207_s6 = int_to_ptr.hbm [resolvable:$true] %s206_s6 }
   0xc   : > { %p1945_p7 = pnand %p1448_p4, %p192_p6  ;;  %p1452_p8 = scmp.ge.s32.totalorder %s1820_s23, 2 }
   0xd   : > { %s1822_s8 = smov [#allocation5]   ;;  %s220_s12 = sshll.u32 %s2509_s2, 4  ;;  %s221_s12 = int_to_ptr.hbm [resolvable:$true] %s220_s12 }
   0xe   : > { %p1487_p9 = pneg %p1945_p7  ;;  %s208_s9 = sshll.u32 %s1822_s8, 4  ;;  %s209_s9 = int_to_ptr.vmem [resolvable:$true] %s208_s9 }
   0xf   : > { %s1823_s13 = smov [#allocation7]   ;;  %p179_p11 = scmp.eq.s32.totalorder %s1446_s24, 1 }
  0x10   : > { %p1488_p10 = pnand %p1487_p9, %p1926_p1  ;;  %s222_s14 = sshll.u32 %s1823_s13, 4  ;;  %s223_s14 = int_to_ptr.vmem [resolvable:$true] %s222_s14 }
  0x11   : > { %s34_s15 = sadd.s32 1, %s1816_s22  ;;  %s41_s16 = sadd.s32 1, %s1808_s20 }
  0x12   : > { %1490 = dma.hbm_to_vmem [thread:$0]  (!%p1488_p10), %s207_s6, 64, %s209_s9, [#allocation6]  }
  0x13   : > { %1493 = dma.hbm_to_vmem [thread:$0]  (!%p1488_p10), %s221_s12, 64, %s223_s14, [#allocation6]  }
  0x14   : > { %p36_p12 = scmp.ge.s32.totalorder %s34_s15, 2  ;;  %p48_p13 = scmp.ne.s32.totalorder %s1808_s20, %s1804_s19 }
  0x15   : > { %p49_p0 = scmp.eq.s32.totalorder %s1820_s23, 0  ;;  %p1504_p4 = scmp.lt.s32.totalorder %s1820_s23, 2 }
  0x16   : > { %s2524_s15 = smov (%p36_p12, %s34_s15), 0  ;;  %p1964_p2 = por %p179_p11, %p48_p13 }
  0x17   : > { %s38_s25 = ssub.s32 %s1816_s22, %s2524_s15  ;;  %s243_s29 = sand.u32 1, %s1808_s20  }
  0x18   : > { %p39_p6 = scmp.eq.s32.totalorder %s38_s25, 0  ;;  %p50_p9 = por %p49_p0, %p48_p13 }
  0x19   : > { %s1453_s30 = sshll.u32 %s243_s29, 3  ;;  %s1473_s24 = sshll.u32 %s1816_s22, 3 }
  0x1a   : > { %s1974_s6 = scalar_select %p39_p6, %s1808_s20, %s41_s16  }
  0x1b   : > { %s252_s10 = scalar_lea.hbm %s2507_s0, %s1473_s24  ;;  %s247_s12 = scalar_lea.vmem [#allocation2], %s1453_s30 }
  0x1c   : > { %s254_s11 = sshll.u32 %s252_s10, 4  ;;  %s256_s13 = sshll.u32 %s247_s12, 4  ;;  %s255_s11 = int_to_ptr.hbm [resolvable:$true] %s254_s11  ;;  %s257_s13 = int_to_ptr.vmem [resolvable:$true] %s256_s13 }
  0x1d   : > { %p1495_p10 = pnand %p1504_p4, %p50_p9  ;;  %s244_s14 = scalar_lea.sflag [#allocation3], %s243_s29 }
  0x1e   : > { %265 = sbr.rel (%p1945_p7) target bundleno = 850 (0x352), region = 40  ;;  %s1984_s16 = sand.u32 (!%p1945_p7), 1, %s1804_s19  }
  0x1f   : > { %1497 = dma.hbm_to_vmem [thread:$0]  (!%p1495_p10), %s255_s11, 128, %s257_s13, %s244_s14  }
  0x20   : > { %s1457_s25 = sshll.u32 (!%p1945_p7), %s1984_s16, 3  ;;  %s268_s24 = scalar_lea.sflag (!%p1945_p7), [#allocation3], %s1984_s16 }
  0x21   : > { %s271_s8 = scalar_lea.vmem (!%p1945_p7), [#allocation2], %s1457_s25 }
  0x23   : > { %1787 = dma.done.wait (%p1932_p3), %s268_s24, 128  }
  0x24   : > { %1789 = vsyncadd (%p1932_p3), %s268_s24, 4294967168 }
  0x25   : > { %1791 = dma.done.wait (%p1926_p1), [#allocation6], 128  }
  0x26   : > { %1793 = vsyncadd (%p1926_p1), [#allocation6], 4294967168  ;;  %v1824_v0 = vmov 15   ;;  %v1825_v1 = vmov 0   ;;  %v1826_v2 = vmov 5   ;;  %v318_v5 = vld [vmem:[%s271_s8] sm:$0xff] }
  0x27   : > { %1599 = vset.pattern.permute.xlu2 %v1824_v0  ;;  %1596 = vset.pattern.permute.xlu0 %v1825_v1  ;;  %v1996_v3 = vld [vmem:[#allocation7] sm:$0xf]  ;;  %v317_v4 = vld [vmem:[%s2510_s3] sm:$0xf]  ;;  %326 = vst [vmem:[#allocation1] ss:$2 sm:$0xff] %v318_v5 }
  0x28   : > { %1597 = vset.pattern.permute.xlu1 %v1826_v2  ;;  %485 = vperm.xlu2 %1599, %v1996_v3   ;;  %v534_v6 = vld [vmem:[%s2511_s4] ss:$4 sm:$0x3]  ;;  %vm333_vm0 = vcmask 1043456   ;;  %v319_v8 = vld [vmem:[#allocation5] sm:$0xf] }
  0x29   : > { %322 = vperm.xlu0 %1596, %v317_v4   ;;  %435 = vperm.xlu1 %1597, %v1996_v3   ;;  %v536_v7 = vperm.slane %v534_v6, 0  ;;  %vm329_vm1 = vcmask 31744   ;;  %s1827_s30 = smov 94   ;;  %v1828_v11 = vmov 6   ;;  %v1829_v12 = vmov 1   ;;  %s1835_s11 = smov 95  }
  0x2a   : > { %v1830_v13 = vmov 10   ;;  %v1831_v14 = vmov 2   ;;  %v1832_v15 = vmov 16   ;;  %v1833_v16 = vmov 20   ;;  %s1840_s12 = smov 80   ;;  %s1842_s13 = smov 112  }
  0x2b   : > { %v1465_v17 = vld [vmem:[%s2511_s4 + $0x1] ss:$4 sm:$0x3]  ;;  %v1834_v19 = vmov 17   ;;  %v537_v20 = vperm.slane %v534_v6, 1  ;;  %v1836_v21 = vmov 7  }
  0x2c   : > { %v662_v18 = vperm.slane %v1465_v17, 0  ;;  %v1837_v22 = vmov 11   ;;  %v1838_v23 = vmov 21   ;;  %v663_v24 = vperm.slane %v1465_v17, 1  ;;  %s1845_s14 = smov 96   ;;  %s1847_s25 = smov 64  }
  0x2d   : > { %v1839_v25 = vmov 12   ;;  %v1841_v28 = vmov 9   ;;  %v1843_v32 = vmov 8   ;;  %v1844_v44 = vmov 14   ;;  %s1855_s7 = smov 97   ;;  %s1856_s26 = smov 98  }
  0x2e   : > { %v327_v9 = vld.sshfl [vmem:[#allocation1] sm:$0xff pattern:$0x75316420]  ;;  %v328_v10 = vld.sshfl [vmem:[#allocation1 + $0x8] sm:$0xff pattern:$0x75316420] }
  0x2f   : > { %1461 = vmatpush.msk.msra.mxu0 %vm333_vm0, %v327_v9  ;;  %1463 = vmatpush.msk.msra.mxu1 %vm333_vm0, %v328_v10  ;;  %v1846_v55 = vmov 19   ;;  %v1848_v56 = vmov 13   ;;  %v1849_v62 = vmov 22   ;;  %v1850_v1 = vmov 3   ;;  %s1858_s9 = smov 127   ;;  %s1859_s10 = smov 125  }
  0x30   : > { %538 = vrot.lane.b32.xlu2 %v536_v7, %s1827_s30  ;;  %1462 = vmatmul.msk.f32.vlgmr.msra.gmra.mxu0 %vm329_vm1, %v319_v8  ;;  %vm450_vm10 = vcmask 916480   ;;  %vm475_vm11 = vcmask 785408   ;;  %vm525_vm12 = vcmask 523264   ;;  %vm500_vm13 = vcmask 654336   ;;  %s1474_s24 = sshll.u32 %s1812_s21, 4 }
  0x31   : > { %425 = vperm.xlu0 %1596, %v1996_v3   ;;  %1464 = vmatmul.msk.f32.vlgmr.msra.gmra.mxu1 %vm329_vm1, %v319_v8  ;;  %v1851_v8 = vmov 4   ;;  %vm928_vm14 = vcmask 793600   ;;  %vm668_vm15 = vcmask 777216   ;;  %vm1069_vm0 = vcmask 801792   ;;  %s1322_s29 = scalar_lea.hbm %s2512_s5, %s1474_s24 }
  0x32   : > { %1602 = vset.pattern.permute.xlu2 %v1828_v11  ;;  %1601 = vset.pattern.permute.xlu1 %v1829_v12  ;;  %vm542_vm1 = vcmask 769024  }
  0x33   : > { %554 = vperm.xlu1 %1601, %v1996_v3  }
  0x38   : > { %564 = vperm.xlu2 %1602, %v1996_v3  }
  0x39   : > { %1598 = vset.pattern.permute.xlu0 %v1830_v13 }
  0x3a   : > { %460 = vperm.xlu0 %1598, %v1996_v3  }
  0x3b   : > { %1606 = vset.pattern.permute.xlu1 %v1831_v14 }
  0x3c   : > { %695 = vperm.xlu1 %1606, %v1996_v3  }
  0x40   : > { %1604 = vset.pattern.permute.xlu2 %v1832_v15 }
  0x41   : > { %612 = vperm.xlu2 %1604, %v1996_v3  }
  0x42   : > { %1600 = vset.pattern.permute.xlu0 %v1833_v16 }
  0x43   : > { %510 = vperm.xlu0 %1600, %v1996_v3  }
  0x44   : > { %1609 = vset.pattern.permute.xlu1 %v1834_v19 }
  0x45   : > { %748 = vperm.xlu1 %1609, %v1996_v3  }
  0x49   : > { %664 = vrot.lane.b32.xlu2 %v662_v18, %s1835_s11 }
  0x4a   : > { %1607 = vset.pattern.permute.xlu2 %v1836_v21 }
  0x4b   : > { %540 = vrot.lane.b32.xlu0 %v537_v20, %s1827_s30  ;;  %s1857_s30 = smov 126  }
  0x4c   : > { %1603 = vset.pattern.permute.xlu0 %v1837_v22 }
  0x4d   : > { %1611 = vset.pattern.permute.xlu1 %v1848_v56 }
  0x51   : > { %705 = vperm.xlu2 %1607, %v1996_v3  }
  0x53   : > { %588 = vperm.xlu0 %1603, %v1996_v3  }
  0x59   : > { %1612 = vset.pattern.permute.xlu2 %v1841_v28 }
  0x5b   : > { %1605 = vset.pattern.permute.xlu0 %v1838_v23 }
  0x5c   : > { %636 = vperm.xlu0 %1605, %v1996_v3  }
  0x64   : > { %666 = vrot.lane.b32.xlu0 %v663_v24, %s1835_s11  ;;  %s1860_s11 = smov 124  }
  0x65   : > { %1608 = vset.pattern.permute.xlu0 %v1839_v25 }
  0x6c   : > { %729 = vperm.xlu0 %1608, %v1996_v3  }
  0x74   : > { %1610 = vset.pattern.permute.xlu0 %v1843_v32 }
  0x82   : > { %v2024_v26 = vpop.permute.xlu2 %485 }
  0x83   : > { %v490_v27 = vmul.f32 0.0, %v2024_v26 }
  0x85   : > { %498 = vrot.lane.b32.xlu2 %v490_v27, %s1840_s12 }
  0x8a   : > { %v2028_v29 = vpop.permute.xlu2 %538 }
  0x92   : > { %v2030_v30 = vpop.permute.xlu2 %564 }
  0x93   : > { %v567_v31 = vmul.f32 0.0, %v2030_v30 }
  0x95   : > { %573 = vrot.lane.b32.xlu0 %v567_v31, %s1842_s13 }
  0x9b   : > { %v323_v33 = vpop.permute.xlu0 %322  ;;  %v2034_v34 = vpop.permute.xlu2 %612 }
  0x9c   : > { %v2036_v35 = vpop.permute.xlu1 %435  ;;  %v617_v36 = vmul.f32 0.0, %v2034_v34 }
  0x9d   : > { %v438_v37 = vmul.f32 0.0, %v2036_v35 }
  0x9e   : > { %625 = vrot.lane.b32.xlu2 %v617_v36, %s1840_s12 }
  0x9f   : > { %444 = vrot.lane.b32.xlu1 %v438_v37, %s1842_s13 }
  0xa3   : > { %v2042_v38 = vpop.permute.xlu0 %425  ;;  %v2044_v39 = vpop.permute.xlu2 %664 }
  0xa6   : > { %965 = vperm.xlu2 %1612, %v1996_v3  }
  0xab   : > { %v2047_v40 = vpop.permute.xlu2 %705 }
  0xac   : > { %v708_v41 = vmul.f32 0.0, %v2047_v40  ;;  %v2050_v42 = vpop.permute.xlu0 %460 }
  0xad   : > { %v463_v43 = vmul.f32 0.0, %v2050_v42  ;;  %v355_v45 = vpop.f32.mrf.mxu0 }
  0xae   : > { %1614 = vset.pattern.permute.xlu2 %v1844_v44  ;;  %714 = vrot.lane.b32.xlu0 %v708_v41, %s1842_s13  ;;  %v375_v46 = vpop.f32.mrf.mxu1  ;;  %v2056_v47 = vadd.f32 %v355_v45, %v323_v33  ;;  %v1852_v45 = vmov 18  }
  0xaf   : > { %469 = vrot.lane.b32.xlu1 %v463_v43, %s1845_s14  ;;  %989 = vperm.xlu2 %1614, %v1996_v3   ;;  %v2058_v48 = vadd.f32 %v375_v46, %v323_v33 }
  0xb0   : > { %v378_v49 = vmin.f32 %v2056_v47, 20.0 }
  0xb1   : > { %v379_v50 = vmin.f32 %v2058_v48, 20.0 }
  0xb2   : > { %v380_v51 = vmul.f32 1.442695, %v378_v49 }
  0xb3   : > { %v382_v52 = vmul.f32 1.442695, %v379_v50  ;;  %v1854_v50 = vmov 24  }
  0xb4   : > { %1623 = vpow2.f32 %v380_v51 }
  0xb5   : > { %v2062_v53 = vpop.permute.xlu0 %510  ;;  %1625 = vpow2.f32 %v382_v52 }
  0xb6   : > { %v515_v54 = vmul.f32 0.0, %v2062_v53  ;;  %824 = vperm.xlu0 %1610, %v1996_v3  }
  0xb7   : > { %1617 = vset.pattern.permute.xlu2 %v1846_v55  ;;  %v2115_v55 = vpop.permute.xlu1 %554 }
  0xb8   : > { %523 = vrot.lane.b32.xlu1 %v515_v54, %s1847_s25  ;;  %1013 = vperm.xlu2 %1617, %v1996_v3  }
  0xba   : > { %v1624_v57 = vpop.eup %1623 }
  0xbb   : > { %v1626_v58 = vpop.eup %1625  ;;  %v384_v59 = vadd.f32 2.0, %v1624_v57 }
  0xbc   : > { %v385_v61 = vadd.f32 2.0, %v1626_v58 }
  0xbd   : > { %v2068_v60 = vpop.permute.xlu0 %540  ;;  %v386_v63 = vmul.f32 %v1624_v57, %v384_v59 }
  0xbe   : > { %1615 = vset.pattern.permute.xlu0 %v1849_v62  ;;  %v387_v0 = vmul.f32 %v1626_v58, %v385_v61 }
  0xbf   : > { %772 = vperm.xlu0 %1615, %v1996_v3   ;;  %v388_v2 = vadd.f32 2.0, %v386_v63  ;;  %v2131_v59 = vpop.permute.xlu1 %695 }
  0xc0   : > { %1619 = vset.pattern.permute.xlu2 %v1850_v1  ;;  %v389_v4 = vadd.f32 2.0, %v387_v0 }
  0xc1   : > { %814 = vperm.xlu2 %1619, %v1996_v3   ;;  %1627 = vrcp.f32 %v388_v2  ;;  %v401_v14 = vand.u32 2147483648, %v388_v2  ;;  %v399_v17 = vand.u32 2147483647, %v388_v2  ;;  %vm395_vm3 = vweird.f32 %v388_v2 }
  0xc2   : > { %1629 = vrcp.f32 %v389_v4  ;;  %v416_v25 = vand.u32 2147483648, %v389_v4  ;;  %vm410_vm7 = vweird.f32 %v389_v4  ;;  %v414_v28 = vand.u32 2147483647, %v389_v4 }
  0xc3   : > { %v402_v22 = vor.u32 1.1754944e-38, %v401_v14  ;;  %vm400_vm6 = vcmp.eq.f32.partialorder %v399_v17, 8.507059e+37 }
  0xc4   : > { %v417_v33 = vor.u32 1.1754944e-38, %v416_v25  ;;  %vm415_vm9 = vcmp.eq.f32.partialorder %v414_v28, 8.507059e+37 }
  0xc5   : > { %v2072_v5 = vpop.permute.xlu0 %588 }
  0xc6   : > { %v591_v6 = vmul.f32 0.0, %v2072_v5 }
  0xc7   : > { %1622 = vset.pattern.permute.xlu0 %v1829_v12  ;;  %v1628_v7 = vpop.eup %1627 }
  0xc8   : > { %597 = vrot.lane.b32.xlu1 %v591_v6, %s1845_s14  ;;  %v1630_v9 = vpop.eup %1629  ;;  %v391_v10 = vmul.f32 %v1628_v7, %v388_v2  ;;  %vm396_vm2 = vweird.f32 %v1628_v7 }
  0xc9   : > { %1620 = vset.pattern.permute.xlu2 %v1851_v8  ;;  %v406_v11 = vmul.f32 %v1630_v9, %v389_v4  ;;  %vm397_vm4 = vmor %vm395_vm3, %vm396_vm2  ;;  %vm411_vm5 = vweird.f32 %v1630_v9  ;;  %vm685_vm2 = vcmask 1039360   ;;  %vm804_vm3 = vcmask 1031168  }
  0xca   : > { %955 = vperm.xlu2 %1620, %v1996_v3   ;;  %v392_v13 = vsub.f32 1.0, %v391_v10  ;;  %vm412_vm8 = vmor %vm410_vm7, %vm411_vm5  ;;  %vm1086_vm5 = vcmask 1014784  }
  0xcb   : > { %v407_v15 = vsub.f32 1.0, %v406_v11 }
  0xcc   : > { %v393_v16 = vmul.f32 %v1628_v7, %v392_v13 }
  0xcd   : > { %v408_v19 = vmul.f32 %v1630_v9, %v407_v15 }
  0xce   : > { %v2078_v18 = vpop.permute.xlu0 %636  ;;  %v394_v21 = vadd.f32 %v1628_v7, %v393_v16 }
  0xcf   : > { %v641_v20 = vmul.f32 0.0, %v2078_v18  ;;  %v409_v23 = vadd.f32 %v1630_v9, %v408_v19 }
  0xd0   : > { %v398_v24 = vsel %vm397_vm4, %v1628_v7, %v394_v21  ;;  %vm945_vm4 = vcmask 1022976  }
  0xd1   : > { %649 = vrot.lane.b32.xlu1 %v641_v20, %s1847_s25  ;;  %v403_v27 = vsel %vm400_vm6, %v402_v22, %v398_v24  ;;  %v413_v32 = vsel %vm412_vm8, %v1630_v9, %v409_v23 }
  0xd2   : > { %v404_v31 = vmul.f32 %v403_v27, %v386_v63  ;;  %v418_v37 = vsel %vm415_vm9, %v417_v33, %v413_v32 }
  0xd3   : > { %v419_v41 = vmul.f32 %v418_v37, %v387_v0 }
  0xd4   : > { %v2083_v36 = vmul.f32 %v404_v31, %v2056_v47  ;;  %v1853_v47 = vmov 23  }
  0xd5   : > { %v2090_v44 = vmul.f32 %v419_v41, %v2058_v48 }
  0xd6   : > { %v439_v43 = vmul.f32 %v2036_v35, %v2083_v36  ;;  %v464_v49 = vmul.f32 %v2050_v42, %v2083_v36  ;;  %v592_v56 = vmul.f32 %v2072_v5, %v2083_v36  ;;  %v513_v58 = vmul.f32 %v2062_v53, %v2083_v36 }
  0xd7   : > { %v440_v46 = vmul.f32 %v2036_v35, %v2090_v44  ;;  %v514_v48 = vmul.f32 %v2062_v53, %v2090_v44  ;;  %v465_v35 = vmul.f32 %v2050_v42, %v2090_v44  ;;  %v569_v52 = vmul.f32 %v2030_v30, %v2090_v44  ;;  %v2123_v42 = vpop.permute.xlu0 %666  ;;  %v2143_v53 = vpop.permute.xlu1 %748 }
  0xd8   : > { %446 = vrot.lane.b32.xlu2 %v439_v43, %s1842_s13  ;;  %v568_v63 = vmul.f32 %v2030_v30, %v2083_v36  ;;  %v710_v0 = vmul.f32 %v2047_v40, %v2090_v44  ;;  %v593_v2 = vmul.f32 %v2072_v5, %v2090_v44  ;;  %v616_v8 = vmul.f32 %v2034_v34, %v2090_v44 }
  0xd9   : > { %848 = vperm.xlu1 %1611, %v1996_v3   ;;  %v751_v9 = vmul.f32 %v2143_v53, %v2083_v36  ;;  %v639_v14 = vmul.f32 %v2078_v18, %v2083_v36  ;;  %v488_v16 = vmul.f32 %v2024_v26, %v2083_v36  ;;  %v709_v19 = vmul.f32 %v2047_v40, %v2083_v36 }
  0xda   : > { %v615_v23 = vmul.f32 %v2034_v34, %v2083_v36  ;;  %v430_v40 = vmul.f32 %v2042_v38, %v2090_v44  ;;  %v429_v27 = vmul.f32 %v2042_v38, %v2083_v36 }
  0xdf   : > { %v2103_v51 = vpop.permute.xlu2 %498  ;;  %v730_v61 = vpop.permute.xlu0 %729 }
  0xe0   : > { %448 = vrot.lane.b32.xlu2 %v440_v46, %s1842_s13  ;;  %v733_v4 = vmul.f32 %v730_v61, %v2090_v44 }
  0xe1   : > { %1613 = vset.pattern.permute.xlu1 %v1852_v45 }
  0xe2   : > { %872 = vperm.xlu1 %1613, %v1996_v3  }
  0xe8   : > { %471 = vrot.lane.b32.xlu2 %v464_v49, %s1845_s14 }
  0xea   : > { %1616 = vset.pattern.permute.xlu1 %v1853_v47 }
  0xeb   : > { %896 = vperm.xlu1 %1616, %v1996_v3  }
  0xf0   : > { %521 = vrot.lane.b32.xlu2 %v514_v48, %s1847_s25 }
  0xf3   : > { %1618 = vset.pattern.permute.xlu1 %v1854_v50 }
  0xf4   : > { %1037 = vperm.xlu1 %1618, %v1996_v3   ;;  %v489_v3 = vmul.f32 %v2024_v26, %v2090_v44  ;;  %v732_v26 = vmul.f32 %v730_v61, %v2083_v36 }
  0xf8   : > { %v2111_v54 = vpop.permute.xlu2 %625  ;;  %577 = vrot.lane.b32.xlu2 %v569_v52, %s1842_s13 }
  0xfc   : > { %473 = vrot.lane.b32.xlu1 %v465_v35, %s1845_s14 }
  0xfd   : > { %1621 = vset.pattern.permute.xlu1 %v1829_v12  ;;  %v640_v12 = vmul.f32 %v2078_v18, %v2090_v44  ;;  %v428_v18 = vmul.f32 0.0, %v2042_v38 }
 0x100   : > { %599 = vrot.lane.b32.xlu2 %v592_v56, %s1845_s14  ;;  %v2125_v57 = vpop.permute.xlu2 %965  ;;  %v752_v56 = vmul.f32 %v2143_v53, %v2090_v44 }
 0x101   : > { %v969_v35 = vmul.f32 %v2125_v57, %v2083_v36  ;;  %v970_v52 = vmul.f32 %v2125_v57, %v2090_v44 }
 0x104   : > { %496 = vrot.lane.b32.xlu1 %v489_v3, %s1840_s12 }
 0x107   : > { %v2145_v1 = vpop.permute.xlu0 %573 }
 0x108   : > { %647 = vrot.lane.b32.xlu2 %v640_v12, %s1847_s25 }
 0x109   : > { %v2135_v62 = vpop.permute.xlu2 %989 }
 0x10c   : > { %519 = vrot.lane.b32.xlu1 %v513_v58, %s1847_s25  ;;  %v559_v58 = vmul.f32 %v2115_v55, %v2090_v44 }
 0x110   : > { %718 = vrot.lane.b32.xlu2 %v710_v0, %s1842_s13 }
 0x111   : > { %v445_v30 = vpop.permute.xlu1 %444 }
 0x112   : > { %v2150_v6 = vpop.permute.xlu2 %1013 }
 0x114   : > { %575 = vrot.lane.b32.xlu1 %v568_v63, %s1842_s13  ;;  %v753_v63 = vmul.f32 0.0, %v2143_v53  ;;  %v992_v53 = vmul.f32 %v2135_v62, %v2083_v36 }
 0x118   : > { %738 = vrot.lane.b32.xlu2 %v733_v4, %s1845_s14 }
 0x11b   : > { %v2161_v5 = vpop.permute.xlu2 %814 }
 0x11c   : > { %601 = vrot.lane.b32.xlu1 %v593_v2, %s1845_s14 }
 0x120   : > { %v2154_v7 = vpop.permute.xlu0 %714  ;;  %757 = vrot.lane.b32.xlu2 %v751_v9, %s1840_s12  ;;  %v968_v9 = vmul.f32 0.0, %v2125_v57  ;;  %v993_v57 = vmul.f32 %v2135_v62, %v2090_v44 }
 0x121   : > { %v470_v10 = vpop.permute.xlu1 %469 }
 0x124   : > { %623 = vrot.lane.b32.xlu1 %v616_v8, %s1840_s12  ;;  %v2168_v15 = vpop.permute.xlu2 %955 }
 0x128   : > { %v825_v11 = vpop.permute.xlu0 %824 }
 0x129   : > { %v827_v13 = vmul.f32 0.0, %v825_v11  ;;  %v828_v32 = vmul.f32 %v825_v11, %v2083_v36  ;;  %v829_v33 = vmul.f32 %v825_v11, %v2090_v44 }
 0x12a   : > { %v524_v17 = vpop.permute.xlu1 %523 }
 0x12b   : > { %833 = vrot.lane.b32.xlu0 %v827_v13, %s1842_s13 }
 0x12c   : > { %645 = vrot.lane.b32.xlu1 %v639_v14, %s1847_s25 }
 0x132   : > { %v447_v20 = vpop.permute.xlu2 %446 }
 0x133   : > { %494 = vrot.lane.b32.xlu0 %v488_v16, %s1840_s12  ;;  %v451_v21 = vsel %vm450_vm10, %v445_v30, %v447_v20  ;;  %v773_v16 = vpop.permute.xlu0 %772 }
 0x134   : > { %716 = vrot.lane.b32.xlu1 %v709_v19, %s1842_s13  ;;  %v456_v22 = vadd.f32 %v451_v21, %v428_v18  ;;  %v775_v19 = vmul.f32 %v773_v16, %v2083_v36  ;;  %v700_v18 = vmul.f32 %v2131_v59, %v2090_v44 }
 0x13a   : > { %v598_v24 = vpop.permute.xlu1 %597  ;;  %v449_v25 = vpop.permute.xlu2 %448 }
 0x13b   : > { %621 = vrot.lane.b32.xlu0 %v615_v23, %s1840_s12  ;;  %v452_v28 = vsel %vm450_vm10, %v447_v20, %v449_v25  ;;  %v458_v31 = vadd.f32 %v449_v25, %v430_v40  ;;  %v777_v40 = vmul.f32 0.0, %v773_v16 }
 0x13c   : > { %736 = vrot.lane.b32.xlu1 %v732_v26, %s1845_s14  ;;  %v457_v34 = vadd.f32 %v452_v28, %v429_v27 }
 0x142   : > { %v472_v41 = vpop.permute.xlu2 %471 }
 0x143   : > { %v650_v37 = vpop.permute.xlu1 %649  ;;  %835 = vrot.lane.b32.xlu0 %v828_v32, %s1842_s13  ;;  %v476_v43 = vsel %vm475_vm11, %v470_v10, %v472_v41 }
 0x144   : > { %837 = vrot.lane.b32.xlu1 %v829_v33, %s1842_s13  ;;  %v2193_v45 = vadd.f32 %v476_v43, %v456_v22 }
 0x14a   : > { %v2199_v48 = vpop.permute.xlu2 %521 }
 0x14b   : > { %v849_v38 = vpop.permute.xlu1 %848  ;;  %v527_v50 = vsel %vm525_vm12, %v2199_v48, %v524_v17  ;;  %v994_v17 = vmul.f32 0.0, %v2135_v62 }
 0x14c   : > { %v851_v46 = vmul.f32 %v849_v38, %v2083_v36  ;;  %v852_v47 = vmul.f32 %v849_v38, %v2090_v44  ;;  %v853_v49 = vmul.f32 0.0, %v849_v38 }
 0x14e   : > { %859 = vrot.lane.b32.xlu2 %v852_v47, %s1845_s14  ;;  %857 = vrot.lane.b32.xlu1 %v851_v46, %s1845_s14  ;;  %v1017_v46 = vmul.f32 %v2150_v6, %v2090_v44  ;;  %v1018_v47 = vmul.f32 0.0, %v2150_v6 }
 0x14f   : > { %861 = vrot.lane.b32.xlu0 %v853_v49, %s1845_s14  ;;  %v557_v49 = vmul.f32 0.0, %v2115_v55 }
 0x152   : > { %v2214_v12 = vpop.permute.xlu2 %577 }
 0x153   : > { %v2218_v61 = vadd.f32 %v2214_v12, %v559_v58 }
 0x154   : > { %v873_v3 = vpop.permute.xlu1 %872 }
 0x155   : > { %v875_v0 = vmul.f32 %v873_v3, %v2083_v36  ;;  %v876_v2 = vmul.f32 %v873_v3, %v2090_v44  ;;  %v877_v10 = vmul.f32 0.0, %v873_v3 }
 0x156   : > { %978 = vrot.lane.b32.xlu2 %v970_v52, %s1842_s13  ;;  %976 = vrot.lane.b32.xlu1 %v969_v35, %s1842_s13 }
 0x157   : > { %759 = vrot.lane.b32.xlu0 %v752_v56, %s1840_s12 }
 0x15a   : > { %v2225_v30 = vpop.permute.xlu2 %599 }
 0x15b   : > { %v603_v8 = vsel %vm475_vm11, %v598_v24, %v2225_v30  ;;  %v776_v24 = vmul.f32 %v773_v16, %v2090_v44 }
 0x15d   : > { %v897_v4 = vpop.permute.xlu1 %896 }
 0x15e   : > { %881 = vrot.lane.b32.xlu2 %v875_v0, %s1840_s12  ;;  %761 = vrot.lane.b32.xlu1 %v753_v63, %s1840_s12  ;;  %v899_v25 = vmul.f32 %v897_v4, %v2083_v36  ;;  %v901_v33 = vmul.f32 0.0, %v897_v4 }
 0x15f   : > { %883 = vrot.lane.b32.xlu0 %v876_v2, %s1840_s12 }
 0x162   : > { %v2237_v13 = vpop.permute.xlu2 %647 }
 0x163   : > { %v2242_v14 = vsel %vm525_vm12, %v2237_v13, %v650_v37  ;;  %v1016_v37 = vmul.f32 %v2150_v6, %v2083_v36 }
 0x166   : > { %v2233_v11 = vpop.permute.xlu1 %1037  ;;  %974 = vrot.lane.b32.xlu2 %v968_v9, %s1842_s13  ;;  %885 = vrot.lane.b32.xlu1 %v877_v10, %s1840_s12  ;;  %s1754_s13 = scalar_lea.hbm %s2512_s5, 32 }
 0x167   : > { %998 = vrot.lane.b32.xlu0 %v992_v53, %s1845_s14  ;;  %v1041_v63 = vmul.f32 %v2233_v11, %v2090_v44  ;;  %v1042_v10 = vmul.f32 0.0, %v2233_v11 }
 0x16a   : > { %v2252_v21 = vpop.permute.xlu2 %718 }
 0x16b   : > { %v2257_v26 = vadd.f32 %v2252_v21, %v700_v18 }
 0x16e   : > { %v474_v20 = vpop.permute.xlu1 %473  ;;  %1002 = vrot.lane.b32.xlu2 %v994_v17, %s1845_s14  ;;  %1000 = vrot.lane.b32.xlu1 %v993_v57, %s1845_s14  ;;  %s1861_s14 = smov 34  }
 0x16f   : > { %v477_v22 = vsel %vm475_vm11, %v472_v41, %v474_v20  ;;  %v483_v23 = vadd.f32 %v474_v20, %v458_v31  ;;  %781 = vrot.lane.b32.xlu0 %v775_v19, %s1847_s25 }
 0x170   : > { %v2259_v62 = vadd.f32 %v477_v22, %v457_v34  ;;  %v900_v34 = vmul.f32 %v897_v4, %v2090_v44  ;;  %v1467_v4 = vld [vmem:[%s2511_s4 + $0x3] ss:$4 sm:$0x3]  ;;  %v699_v22 = vmul.f32 %v2131_v59, %v2083_v36 }
 0x171   : > { %v1064_v9 = vperm.slane %v1467_v4, 1 }
 0x172   : > { %v2306_v53 = vpop.permute.xlu2 %738 }
 0x176   : > { %v497_v27 = vpop.permute.xlu1 %496  ;;  %783 = vrot.lane.b32.xlu1 %v776_v24, %s1847_s25  ;;  %785 = vrot.lane.b32.xlu2 %v777_v40, %s1847_s25 }
 0x177   : > { %v502_v28 = vsel %vm500_vm13, %v497_v27, %v2103_v51  ;;  %905 = vrot.lane.b32.xlu0 %v899_v25, %s1847_s25  ;;  %v1466_v51 = vld [vmem:[%s2511_s4 + $0x2] ss:$4 sm:$0x3] }
 0x178   : > { %v508_v31 = vadd.f32 %v502_v28, %v483_v23  ;;  %v922_v38 = vperm.slane %v1466_v51, 0  ;;  %v923_v56 = vperm.slane %v1466_v51, 1 }
 0x17a   : > { %v2268_v32 = vadd.f32 %v527_v50, %v508_v31  ;;  %v558_v50 = vmul.f32 %v2115_v55, %v2083_v36  ;;  %v1040_v55 = vmul.f32 %v2233_v11, %v2083_v36  ;;  %v2316_v18 = vpop.permute.xlu2 %757 }
 0x17e   : > { %v520_v41 = vpop.permute.xlu1 %519  ;;  %907 = vrot.lane.b32.xlu1 %v900_v34, %s1847_s25  ;;  %909 = vrot.lane.b32.xlu2 %v901_v33, %s1847_s25 }
 0x17f   : > { %v526_v43 = vsel %vm525_vm12, %v520_v41, %v2199_v48  ;;  %1022 = vrot.lane.b32.xlu0 %v1016_v37, %s1840_s12 }
 0x186   : > { %v576_v35 = vpop.permute.xlu1 %575  ;;  %1024 = vrot.lane.b32.xlu1 %v1017_v46, %s1840_s12  ;;  %1026 = vrot.lane.b32.xlu2 %v1018_v47, %s1840_s12 }
 0x187   : > { %v579_v48 = vsel %vm450_vm10, %v2145_v1, %v576_v35  ;;  %v580_v52 = vsel %vm450_vm10, %v576_v35, %v2214_v12  ;;  %924 = vrot.lane.b32.xlu0 %v922_v38, %s1855_s7 }
 0x188   : > { %v584_v3 = vadd.f32 %v579_v48, %v557_v49  ;;  %v585_v6 = vadd.f32 %v580_v52, %v558_v50  ;;  %v818_v49 = vmul.f32 %v2161_v5, %v2083_v36 }
 0x18a   : > { %v608_v58 = vadd.f32 %v603_v8, %v584_v3  ;;  %v1063_v8 = vperm.slane %v1467_v4, 0 }
 0x18e   : > { %v602_v0 = vpop.permute.xlu1 %601  ;;  %926 = vrot.lane.b32.xlu1 %v923_v56, %s1855_s7  ;;  %1046 = vrot.lane.b32.xlu2 %v1040_v55, %s1847_s25 }
 0x18f   : > { %v604_v1 = vsel %vm475_vm11, %v2225_v30, %v602_v0  ;;  %v610_v12 = vadd.f32 %v602_v0, %v2218_v61  ;;  %1048 = vrot.lane.b32.xlu0 %v1041_v63, %s1847_s25 }
 0x190   : > { %v609_v2 = vadd.f32 %v604_v1, %v585_v6 }
 0x196   : > { %v624_v16 = vpop.permute.xlu1 %623  ;;  %1050 = vrot.lane.b32.xlu1 %v1042_v10, %s1847_s25  ;;  %1065 = vrot.lane.b32.xlu2 %v1063_v8, %s1856_s26  ;;  %s1460_s25 = sshll.u32 %s1984_s16, 4 }
 0x197   : > { %v628_v61 = vsel %vm500_vm13, %v624_v16, %v2111_v54  ;;  %1067 = vrot.lane.b32.xlu0 %v1064_v9, %s1856_s26  ;;  %s312_s27 = scalar_lea.vmem [#allocation8], %s1460_s25 }
 0x198   : > { %v634_v30 = vadd.f32 %v628_v61, %v610_v12  ;;  %s1324_s26 = sshll.u32 %s312_s27, 4  ;;  %s1325_s26 = int_to_ptr.vmem [resolvable:$true] %s1324_s26 }
 0x19a   : > { %v2312_v57 = vadd.f32 %v2242_v14, %v634_v30 }
 0x19d   : > { %v834_v17 = vpop.permute.xlu0 %833 }
 0x19e   : > { %v646_v19 = vpop.permute.xlu1 %645 }
 0x19f   : > { %v651_v11 = vsel %vm525_vm12, %v646_v19, %v2237_v13 }
 0x1a5   : > { %v495_v20 = vpop.permute.xlu0 %494 }
 0x1a6   : > { %v717_v23 = vpop.permute.xlu1 %716  ;;  %v501_v24 = vsel %vm500_vm13, %v495_v20, %v497_v27  ;;  %v506_v54 = vadd.f32 %v495_v20, %v2193_v45  ;;  %v960_v27 = vmul.f32 %v2168_v15, %v2090_v44 }
 0x1a7   : > { %v721_v14 = vsel %vm450_vm10, %v717_v23, %v2252_v21  ;;  %v507_v40 = vadd.f32 %v501_v24, %v2259_v62 }
 0x1a8   : > { %v726_v25 = vadd.f32 %v721_v14, %v699_v22  ;;  %v2325_v28 = vadd.f32 %v520_v41, %v506_v54  ;;  %v860_v13 = vpop.permute.xlu2 %859  ;;  %v817_v41 = vmul.f32 0.0, %v2161_v5 }
 0x1a9   : > { %v2327_v31 = vadd.f32 %v526_v43, %v507_v40  ;;  %v819_v43 = vmul.f32 %v2161_v5, %v2090_v44 }
 0x1ad   : > { %v622_v34 = vpop.permute.xlu0 %621 }
 0x1ae   : > { %v737_v33 = vpop.permute.xlu1 %736  ;;  %v627_v37 = vsel %vm500_vm13, %v622_v34, %v624_v16  ;;  %v632_v51 = vadd.f32 %v622_v34, %v608_v58 }
 0x1af   : > { %v633_v45 = vadd.f32 %v627_v37, %v609_v2  ;;  %v959_v2 = vmul.f32 %v2168_v15, %v2083_v36  ;;  %v740_v37 = vsel %vm475_vm11, %v737_v33, %v2306_v53 }
 0x1b0   : > { %v2332_v38 = vadd.f32 %v646_v19, %v632_v51  ;;  %v979_v21 = vpop.permute.xlu2 %978  ;;  %v698_v19 = vmul.f32 0.0, %v2131_v59 }
 0x1b1   : > { %v2334_v46 = vadd.f32 %v651_v11, %v633_v45  ;;  %v2336_v62 = vadd.f32 %v979_v21, %v960_v27  ;;  %v745_v27 = vadd.f32 %v740_v37, %v726_v25 }
 0x1b5   : > { %v836_v47 = vpop.permute.xlu0 %835 }
 0x1b6   : > { %v838_v50 = vpop.permute.xlu1 %837  ;;  %v839_v35 = vsel %vm450_vm10, %v834_v17, %v836_v47  ;;  %v720_v17 = vsel %vm450_vm10, %v2154_v7, %v717_v23  ;;  %v746_v23 = vadd.f32 %v2306_v53, %v2257_v26 }
 0x1b7   : > { %v846_v48 = vadd.f32 %v838_v50, %v819_v43  ;;  %v840_v52 = vsel %vm450_vm10, %v836_v47, %v838_v50  ;;  %v844_v3 = vadd.f32 %v839_v35, %v817_v41  ;;  %v725_v24 = vadd.f32 %v720_v17, %v698_v19 }
 0x1b8   : > { %v845_v6 = vadd.f32 %v840_v52, %v818_v49  ;;  %v2345_v56 = vpop.permute.xlu2 %881  ;;  %v675_v35 = vmul.f32 %v2123_v42, %v2312_v57  ;;  %v673_v52 = vmul.f32 %v2044_v39, %v2332_v38 }
 0x1b9   : > { %v744_v54 = vadd.f32 %v737_v33, %v725_v24 }
 0x1bb   : > { %v768_v40 = vadd.f32 %v2316_v18, %v744_v54 }
 0x1c0   : > { %v858_v58 = vpop.permute.xlu1 %857  ;;  %v975_v5 = vpop.permute.xlu2 %974 }
 0x1c1   : > { %v863_v55 = vsel %vm475_vm11, %v858_v58, %v860_v13  ;;  %v862_v63 = vpop.permute.xlu0 %861  ;;  %v868_v25 = vadd.f32 %v858_v58, %v844_v3 }
 0x1c2   : > { %v2348_v0 = vadd.f32 %v863_v55, %v845_v6  ;;  %v864_v1 = vsel %vm475_vm11, %v860_v13, %v862_v63  ;;  %v958_v6 = vmul.f32 0.0, %v2168_v15 }
 0x1c3   : > { %v2351_v12 = vadd.f32 %v864_v1, %v846_v48  ;;  %v892_v57 = vadd.f32 %v2345_v56, %v868_v25 }
 0x1c8   : > { %v977_v4 = vpop.permute.xlu1 %976  ;;  %v2358_v16 = vpop.permute.xlu2 %1002 }
 0x1c9   : > { %v981_v8 = vsel %vm450_vm10, %v977_v4, %v979_v21  ;;  %v760_v9 = vpop.permute.xlu0 %759  ;;  %v980_v48 = vsel %vm450_vm10, %v975_v5, %v977_v4 }
 0x1ca   : > { %v2356_v10 = vadd.f32 %v981_v8, %v959_v2  ;;  %v763_v59 = vsel %vm500_vm13, %v2316_v18, %v760_v9  ;;  %v985_v55 = vadd.f32 %v980_v48, %v958_v6  ;;  %v549_v48 = vmul.f32 %v2068_v60, %v2268_v32 }
 0x1cb   : > { %v769_v45 = vadd.f32 %v763_v59, %v745_v27 }
 0x1d0   : > { %v762_v61 = vpop.permute.xlu1 %761  ;;  %v786_v20 = vpop.permute.xlu2 %785 }
 0x1d1   : > { %v884_v30 = vpop.permute.xlu0 %883  ;;  %v764_v7 = vsel %vm500_vm13, %v760_v9, %v762_v61 }
 0x1d2   : > { %v770_v21 = vadd.f32 %v764_v7, %v746_v23  ;;  %v887_v38 = vsel %vm500_vm13, %v2345_v56, %v884_v30 }
 0x1d3   : > { %v893_v17 = vadd.f32 %v887_v38, %v2348_v0 }
 0x1d8   : > { %v886_v11 = vpop.permute.xlu1 %885  ;;  %v910_v51 = vpop.permute.xlu2 %909 }
 0x1d9   : > { %v2363_v22 = vpop.permute.xlu0 %998  ;;  %v888_v3 = vsel %vm500_vm13, %v884_v30, %v886_v11 }
 0x1da   : > { %v1009_v1 = vadd.f32 %v2363_v22, %v985_v55  ;;  %v894_v4 = vadd.f32 %v888_v3, %v2351_v12 }
 0x1e0   : > { %v2365_v14 = vpop.permute.xlu1 %1000  ;;  %v1027_v18 = vpop.permute.xlu2 %1026 }
 0x1e1   : > { %v782_v13 = vpop.permute.xlu0 %781  ;;  %v1004_v56 = vsel %vm475_vm11, %v2363_v22, %v2365_v14  ;;  %v669_v22 = vsel %vm668_vm15, %v2044_v39, %v2123_v42  ;;  %v1643_v39 = vld [vmem:[%s2510_s3] sm:$0xf] }
 0x1e2   : > { %v792_v34 = vadd.f32 %v782_v13, %v768_v40  ;;  %v1010_v0 = vadd.f32 %v1004_v56, %v2356_v10  ;;  %v674_v10 = vmul.f32 %v669_v22, %v2334_v46 }
 0x1e4   : > { %798 = vrot.lane.b32.xlu0 %v792_v34, %s1857_s30 }
 0x1e8   : > { %v784_v41 = vpop.permute.xlu1 %783  ;;  %v1047_v63 = vpop.permute.xlu2 %1046 }
 0x1e9   : > { %v787_v43 = vsel %vm525_vm12, %v782_v13, %v784_v41  ;;  %v788_v47 = vsel %vm525_vm12, %v784_v41, %v786_v20  ;;  %v906_v33 = vpop.permute.xlu0 %905 }
 0x1ea   : > { %v793_v49 = vadd.f32 %v787_v43, %v769_v45  ;;  %v794_v50 = vadd.f32 %v788_v47, %v770_v21  ;;  %v916_v2 = vadd.f32 %v906_v33, %v892_v57 }
 0x1ec   : > { %683 = vrot.lane.b32.xlu0 %v675_v35, %s1858_s9  ;;  %802 = vrot.lane.b32.xlu2 %v794_v50, %s1857_s30 }
 0x1ed   : > { %800 = vrot.lane.b32.xlu1 %v793_v49, %s1857_s30  ;;  %s1326_s30 = sshll.u32 %s1322_s29, 4  ;;  %s1327_s30 = int_to_ptr.hbm [resolvable:$true] %s1326_s30 }
 0x1ee   : > { %s1748_s21 = sshra.s32 %s1327_s30, 4  ;;  %s1749_s21 = int_to_ptr.hbm [resolvable:$true] %s1748_s21 }
 0x1ef   : > { %p1755_p11 = scmp.lt.s32.totalorder %s1749_s21, %s2512_s5 }
 0x1f0   : > { %v908_v26 = vpop.permute.xlu1 %907  ;;  %v1066_v24 = vpop.permute.xlu2 %1065 }
 0x1f1   : > { %v1023_v53 = vpop.permute.xlu0 %1022  ;;  %v912_v15 = vsel %vm525_vm12, %v908_v26, %v910_v51  ;;  %v911_v61 = vsel %vm525_vm12, %v906_v33, %v908_v26  ;;  %v1005_v51 = vsel %vm475_vm11, %v2365_v14, %v2358_v16 }
 0x1f2   : > { %v1033_v58 = vadd.f32 %v1023_v53, %v1009_v1  ;;  %v918_v20 = vadd.f32 %v912_v15, %v894_v4  ;;  %v917_v11 = vadd.f32 %v911_v61, %v893_v17  ;;  %v1011_v45 = vadd.f32 %v1005_v51, %v2336_v62 }
 0x1f3   : > { %v547_v1 = vmul.f32 %v2028_v29, %v2325_v28 }
 0x1f4   : > { %v1057_v19 = vadd.f32 %v1047_v63, %v1033_v58 }
 0x1f5   : > { %679 = vrot.lane.b32.xlu1 %v673_v52, %s1858_s9  ;;  %v543_v52 = vsel %vm542_vm1, %v2028_v29, %v2068_v60 }
 0x1f6   : > { %v1074_v30 = vmul.f32 %v1066_v24, %v1057_v19 }
 0x1f8   : > { %v1025_v8 = vpop.permute.xlu1 %1024 }
 0x1f9   : > { %v925_v9 = vpop.permute.xlu0 %924  ;;  %v1028_v12 = vsel %vm500_vm13, %v1023_v53, %v1025_v8  ;;  %v1029_v23 = vsel %vm500_vm13, %v1025_v8, %v1027_v18 }
 0x1fa   : > { %v933_v5 = vmul.f32 %v925_v9, %v916_v2  ;;  %v1034_v7 = vadd.f32 %v1028_v12, %v1010_v0  ;;  %v1035_v16 = vadd.f32 %v1029_v23, %v1011_v45 }
 0x1fc   : > { %939 = vrot.lane.b32.xlu0 %v933_v5, %s1859_s10 }
 0x200   : > { %v927_v54 = vpop.permute.xlu1 %926 }
 0x201   : > { %v929_v40 = vsel %vm928_vm14, %v925_v9, %v927_v54  ;;  %v935_v13 = vmul.f32 %v927_v54, %v918_v20  ;;  %v1049_v34 = vpop.permute.xlu0 %1048 }
 0x202   : > { %v934_v37 = vmul.f32 %v929_v40, %v917_v11  ;;  %v1052_v59 = vsel %vm525_vm12, %v1047_v63, %v1049_v34  ;;  %v548_v63 = vmul.f32 %v543_v52, %v2327_v31 }
 0x203   : > { %943 = vrot.lane.b32.xlu2 %v935_v13, %s1859_s10  ;;  %v1058_v21 = vadd.f32 %v1052_v59, %v1034_v7 }
 0x204   : > { %1080 = vrot.lane.b32.xlu0 %v1074_v30, %s1860_s11  ;;  %941 = vrot.lane.b32.xlu1 %v934_v37, %s1859_s10  ;;  %s1750_s10 = scalar_lea.hbm %s1749_s21, 16 }
 0x205   : > { %p1751_p1 = scmp.ne.s32.totalorder %s1749_s21, %s1750_s10  ;;  %p1756_p12 = scmp.lt.s32.totalorder %s1754_s13, %s1750_s10 }
 0x207   : > { %p1752_p3 = pnand %p1751_p1, %p1964_p2  ;;  %p1757_p13 = por %p1756_p12, %p1755_p11 }
 0x208   : > { %v1051_v27 = vpop.permute.xlu1 %1050 }
 0x209   : > { %v1068_v41 = vpop.permute.xlu0 %1067  ;;  %v1053_v43 = vsel %vm525_vm12, %v1049_v34, %v1051_v27  ;;  %p1753_p7 = pneg %p1752_p3 }
 0x20a   : > { %v1070_v47 = vsel %vm1069_vm0, %v1066_v24, %v1068_v41  ;;  %v1059_v33 = vadd.f32 %v1053_v43, %v1035_v16 }
 0x20b   : > { %v1075_v14 = vmul.f32 %v1070_v47, %v1058_v21  ;;  %681 = vrot.lane.b32.xlu2 %v674_v10, %s1858_s9  ;;  %s1309_s9 = scalar_lea.sflag [#allocation4], %s1984_s16  ;;  %p1758_p0 = pnand %p1757_p13, %p1753_p7 }
 0x20c   : > { %v1076_v49 = vmul.f32 %v1068_v41, %v1059_v33 }
 0x20d   : > { %1082 = vrot.lane.b32.xlu1 %v1075_v14, %s1860_s11 }
 0x213   : > { %1084 = vrot.lane.b32.xlu2 %v1076_v49, %s1860_s11 }
 0x215   : > { %1096 = vperm.xlu1 %1621, %v1643_v39  }
 0x246   : > { %v803_v62 = vpop.permute.xlu2 %802 }
 0x256   : > { %v799_v50 = vpop.permute.xlu0 %798 }
 0x25d   : > { %v944_v46 = vpop.permute.xlu2 %943 }
 0x25e   : > { %v684_v18 = vpop.permute.xlu0 %683 }
 0x25f   : > { %v801_v42 = vpop.permute.xlu1 %800  ;;  %v693_v57 = vadd.f32 %v684_v18, %v549_v48 }
 0x260   : > { %v805_v58 = vsel %vm804_vm3, %v799_v50, %v801_v42  ;;  %v806_v32 = vsel %vm804_vm3, %v801_v42, %v803_v62  ;;  %vm1188_vm3 = vcmask 1041408  }
 0x261   : > { %v812_v3 = vadd.f32 %v803_v62, %v693_v57 }
 0x263   : > { %v953_v19 = vadd.f32 %v944_v46, %v812_v3 }
 0x265   : > { %v682_v53 = vpop.permute.xlu2 %681 }
 0x266   : > { %v687_v6 = vsel %vm685_vm2, %v682_v53, %v684_v18 }
 0x267   : > { %v680_v35 = vpop.permute.xlu1 %679  ;;  %v692_v2 = vadd.f32 %v687_v6, %v548_v63 }
 0x268   : > { %v686_v55 = vsel %vm685_vm2, %v680_v35, %v682_v53  ;;  %vm1171_vm2 = vcmask 1040384  }
 0x269   : > { %v691_v8 = vadd.f32 %v686_v55, %v547_v1  ;;  %v811_v61 = vadd.f32 %v806_v32, %v692_v2 }
 0x26b   : > { %v810_v4 = vadd.f32 %v805_v58, %v691_v8 }
 0x26d   : > { %v1085_v60 = vpop.permute.xlu2 %1084 }
 0x26e   : > { %v940_v25 = vpop.permute.xlu0 %939  ;;  %v1094_v28 = vadd.f32 %v1085_v60, %v953_v19 }
 0x276   : > { %v942_v26 = vpop.permute.xlu1 %941  ;;  %v1081_v15 = vpop.permute.xlu0 %1080 }
 0x277   : > { %v946_v5 = vsel %vm945_vm4, %v940_v25, %v942_v26  ;;  %v947_v38 = vsel %vm945_vm4, %v942_v26, %v944_v46  ;;  %vm1195_vm4 = vcmask 1043458  }
 0x278   : > { %v951_v20 = vadd.f32 %v946_v5, %v810_v4  ;;  %v952_v29 = vadd.f32 %v947_v38, %v811_v61 }
 0x27f   : > { %v1083_v9 = vpop.permute.xlu1 %1082 }
 0x280   : > { %v1087_v17 = vsel %vm1086_vm5, %v1081_v15, %v1083_v9  ;;  %v1088_v31 = vsel %vm1086_vm5, %v1083_v9, %v1085_v60  ;;  %vm1191_vm5 = vcmask 1042433  }
 0x281   : > { %v1092_v24 = vadd.f32 %v1087_v17, %v951_v20  ;;  %v1093_v11 = vadd.f32 %v1088_v31, %v952_v29 }
 0x287   : > { %v1097_v54 = vpop.permute.xlu1 %1096 }
 0x288   : > { %v2420_v40 = vadd.f32 %v1097_v54, %v1092_v24  ;;  %v2422_v13 = vadd.f32 %v1097_v54, %v1093_v11  ;;  %v2424_v34 = vadd.f32 %v1097_v54, %v1094_v28 }
 0x28a   : > { %v1102_v56 = vmin.f32 %v2420_v40, 20.0  ;;  %v1103_v30 = vmin.f32 %v2422_v13, 20.0  ;;  %v1104_v37 = vmin.f32 %v2424_v34, 20.0 }
 0x28c   : > { %v1105_v12 = vmul.f32 1.442695, %v1102_v56  ;;  %v1107_v0 = vmul.f32 1.442695, %v1103_v30  ;;  %v1109_v51 = vmul.f32 1.442695, %v1104_v37 }
 0x28e   : > { %1631 = vpow2.f32 %v1105_v12 }
 0x28f   : > { %1633 = vpow2.f32 %v1107_v0 }
 0x290   : > { %1635 = vpow2.f32 %v1109_v51 }
 0x294   : > { %v1632_v59 = vpop.eup %1631 }
 0x295   : > { %v1634_v7 = vpop.eup %1633  ;;  %v1111_v22 = vadd.f32 2.0, %v1632_v59 }
 0x296   : > { %v1636_v23 = vpop.eup %1635  ;;  %v1112_v27 = vadd.f32 2.0, %v1634_v7 }
 0x297   : > { %v1113_v45 = vadd.f32 2.0, %v1636_v23  ;;  %v1114_v21 = vmul.f32 %v1632_v59, %v1111_v22 }
 0x298   : > { %v1115_v41 = vmul.f32 %v1634_v7, %v1112_v27 }
 0x299   : > { %v1116_v10 = vmul.f32 %v1636_v23, %v1113_v45  ;;  %v1117_v43 = vadd.f32 2.0, %v1114_v21 }
 0x29a   : > { %v1118_v47 = vadd.f32 2.0, %v1115_v41 }
 0x29b   : > { %v1119_v16 = vadd.f32 2.0, %v1116_v10  ;;  %1637 = vrcp.f32 %v1117_v43  ;;  %vm1125_vm6 = vweird.f32 %v1117_v43  ;;  %v1129_v46 = vand.u32 2147483647, %v1117_v43 }
 0x29c   : > { %1639 = vrcp.f32 %v1118_v47  ;;  %v1131_v35 = vand.u32 2147483648, %v1117_v43  ;;  %v1146_v53 = vand.u32 2147483648, %v1118_v47  ;;  %v1144_v52 = vand.u32 2147483647, %v1118_v47 }
 0x29d   : > { %1641 = vrcp.f32 %v1119_v16  ;;  %v1161_v6 = vand.u32 2147483648, %v1119_v16  ;;  %v1159_v63 = vand.u32 2147483647, %v1119_v16  ;;  %vm1130_vm11 = vcmp.eq.f32.partialorder %v1129_v46, 8.507059e+37 }
 0x29e   : > { %v1132_v1 = vor.u32 1.1754944e-38, %v1131_v35  ;;  %vm1140_vm12 = vweird.f32 %v1118_v47  ;;  %v1147_v9 = vor.u32 1.1754944e-38, %v1146_v53  ;;  %vm1155_vm14 = vweird.f32 %v1119_v16 }
 0x29f   : > { %vm1145_vm15 = vcmp.eq.f32.partialorder %v1144_v52, 8.507059e+37  ;;  %v1162_v5 = vor.u32 1.1754944e-38, %v1161_v6  ;;  %vm1160_vm1 = vcmp.eq.f32.partialorder %v1159_v63, 8.507059e+37 }
 0x2a1   : > { %v1638_v14 = vpop.eup %1637 }
 0x2a2   : > { %v1640_v33 = vpop.eup %1639  ;;  %v1121_v49 = vmul.f32 %v1638_v14, %v1117_v43  ;;  %vm1126_vm7 = vweird.f32 %v1638_v14 }
 0x2a3   : > { %v1642_v39 = vpop.eup %1641  ;;  %v1136_v42 = vmul.f32 %v1640_v33, %v1118_v47  ;;  %vm1141_vm8 = vweird.f32 %v1640_v33  ;;  %vm1127_vm10 = vmor %vm1125_vm6, %vm1126_vm7  ;;  %vm1199_vm6 = vcmask 1044483   ;;  %vm1176_vm7 = vcmask 1042434  }
 0x2a4   : > { %v1122_v62 = vsub.f32 1.0, %v1121_v49  ;;  %v1151_v50 = vmul.f32 %v1642_v39, %v1119_v16  ;;  %vm1156_vm9 = vweird.f32 %v1642_v39  ;;  %vm1142_vm13 = vmor %vm1140_vm12, %vm1141_vm8  ;;  %vm1173_vm8 = vcmask 1041409  }
 0x2a5   : > { %v1137_v18 = vsub.f32 1.0, %v1136_v42  ;;  %vm1157_vm0 = vmor %vm1155_vm14, %vm1156_vm9  ;;  %vm1179_vm9 = vcmask 1043459  }
 0x2a6   : > { %v1123_v26 = vmul.f32 %v1638_v14, %v1122_v62  ;;  %v1152_v25 = vsub.f32 1.0, %v1151_v50 }
 0x2a7   : > { %v1138_v48 = vmul.f32 %v1640_v33, %v1137_v18 }
 0x2a8   : > { %v1124_v55 = vadd.f32 %v1638_v14, %v1123_v26  ;;  %v1153_v57 = vmul.f32 %v1642_v39, %v1152_v25 }
 0x2a9   : > { %v1139_v2 = vadd.f32 %v1640_v33, %v1138_v48 }
 0x2aa   : > { %v1128_v8 = vsel %vm1127_vm10, %v1638_v14, %v1124_v55  ;;  %v1154_v3 = vadd.f32 %v1642_v39, %v1153_v57  ;;  %vm1254_vm10 = vcmask 277504  }
 0x2ab   : > { %v1133_v58 = vsel %vm1130_vm11, %v1132_v1, %v1128_v8  ;;  %v1143_v32 = vsel %vm1142_vm13, %v1640_v33, %v1139_v2  ;;  %v1170_v33 = vrot.slane %v2090_v44, 7 }
 0x2ac   : > { %v1148_v38 = vsel %vm1145_vm15, %v1147_v9, %v1143_v32  ;;  %v1158_v60 = vsel %vm1157_vm0, %v1642_v39, %v1154_v3  ;;  %v1134_v15 = vmul.f32 %v1133_v58, %v1114_v21 }
 0x2ad   : > { %v1149_v4 = vmul.f32 %v1148_v38, %v1115_v41  ;;  %v1163_v61 = vsel %vm1160_vm1, %v1162_v5, %v1158_v60  ;;  %v1172_v49 = vsel %vm1171_vm2, %v2083_v36, %v1170_v33  ;;  %v1174_v53 = vsel %vm1173_vm8, %v2083_v36, %v1170_v33 }
 0x2ae   : > { %v1164_v17 = vmul.f32 %v1163_v61, %v1116_v10  ;;  %v1165_v20 = vmul.f32 %v1134_v15, %v2420_v40  ;;  %v1203_v42 = vperm.slane %v1172_v49, 1  ;;  %v1202_v18 = vperm.slane %v1172_v49, 0 }
 0x2af   : > { %v1166_v31 = vmul.f32 %v1149_v4, %v2422_v13  ;;  %v1175_v52 = vrot.slane %v1174_v53, 1  ;;  %v1177_v32 = vsel %vm1176_vm7, %v2083_v36, %v1170_v33  ;;  %v1180_v38 = vsel %vm1179_vm9, %v2083_v36, %v1170_v33 }
 0x2b0   : > { %v1167_v19 = vmul.f32 %v1164_v17, %v2424_v34  ;;  %v1178_v15 = vrot.slane %v1177_v32, 2  ;;  %v1181_v4 = vrot.slane %v1180_v38, 3 }
 0x2b1   : > { %v1185_v29 = vrot.slane %v1166_v31, 7  ;;  %v1205_v57 = vperm.slane %v1175_v52, 1  ;;  %v1204_v8 = vperm.slane %v1175_v52, 0 }
 0x2b2   : > { %v1186_v28 = vrot.slane %v1167_v19, 6  ;;  %v1207_v19 = vperm.slane %v1178_v15, 1 }
 0x2b3   : > { %v1187_v24 = vsel %vm1171_vm2, %v1165_v20, %v1185_v29  ;;  %v1194_v11 = vsel %vm1176_vm7, %v1165_v20, %v1185_v29  ;;  %v1190_v54 = vsel %vm1173_vm8, %v1165_v20, %v1185_v29  ;;  %v1198_v13 = vsel %vm1179_vm9, %v1165_v20, %v1185_v29 }
 0x2b4   : > { %v1189_v34 = vsel %vm1188_vm3, %v1187_v24, %v1186_v28  ;;  %v1196_v56 = vsel %vm1195_vm4, %v1194_v11, %v1186_v28  ;;  %v1192_v30 = vsel %vm1191_vm5, %v1190_v54, %v1186_v28  ;;  %v1200_v40 = vsel %vm1199_vm6, %v1198_v13, %v1186_v28 }
 0x2b5   : > { %v1220_v37 = vperm.slane %v1189_v34, 2  ;;  %v1219_v12 = vperm.slane %v1189_v34, 1  ;;  %v1218_v0 = vperm.slane %v1189_v34, 0  ;;  %v1197_v51 = vrot.slane %v1196_v56, 2 }
 0x2b6   : > { %v1193_v59 = vrot.slane %v1192_v30, 1  ;;  %v1201_v27 = vrot.slane %v1200_v40, 3  ;;  %v1209_v20 = vperm.slane %v1181_v4, 1  ;;  %v1206_v24 = vperm.slane %v1178_v15, 0 }
 0x2b7   : > { %1234 = vrot.lane.b32.xlu0 %v1220_v37, %s1861_s14  ;;  %1232 = vrot.lane.b32.xlu2 %v1219_v12, %s1861_s14  ;;  %v1225_v7 = vperm.slane %v1197_v51, 1  ;;  %v1226_v41 = vperm.slane %v1197_v51, 2  ;;  %v1224_v10 = vperm.slane %v1197_v51, 0  ;;  %v1208_v13 = vperm.slane %v1181_v4, 0 }
 0x2b8   : > { %1230 = vrot.lane.b32.xlu1 %v1218_v0, %s1861_s14  ;;  %v1223_v22 = vperm.slane %v1193_v59, 2  ;;  %v1222_v23 = vperm.slane %v1193_v59, 1  ;;  %v1229_v45 = vperm.slane %v1201_v27, 2  ;;  %v1228_v21 = vperm.slane %v1201_v27, 1 }
 0x2b9   : > { %v1221_v43 = vperm.slane %v1193_v59, 0  ;;  %v1227_v47 = vperm.slane %v1201_v27, 0 }
 0x2bf   : > { %1244 = vrot.lane.b32.xlu0 %v1225_v7, %s1861_s14  ;;  %1240 = vrot.lane.b32.xlu2 %v1223_v22, %s1861_s14 }
 0x2c0   : > { %1238 = vrot.lane.b32.xlu1 %v1222_v23, %s1861_s14 }
 0x2c7   : > { %1252 = vrot.lane.b32.xlu0 %v1229_v45, %s1861_s14  ;;  %1250 = vrot.lane.b32.xlu2 %v1228_v21, %s1861_s14 }
 0x2c8   : > { %1246 = vrot.lane.b32.xlu1 %v1226_v41, %s1861_s14 }
 0x2cf   : > { %1242 = vrot.lane.b32.xlu0 %v1224_v10, %s1861_s14  ;;  %1236 = vrot.lane.b32.xlu2 %v1221_v43, %s1861_s14 }
 0x2d0   : > { %1248 = vrot.lane.b32.xlu1 %v1227_v47, %s1861_s14 }
 0x311   : > { %v1233_v16 = vpop.permute.xlu2 %1232 }
 0x319   : > { %v1241_v14 = vpop.permute.xlu2 %1240 }
 0x321   : > { %v1251_v39 = vpop.permute.xlu2 %1250 }
 0x329   : > { %v1235_v62 = vpop.permute.xlu0 %1234  ;;  %v1237_v55 = vpop.permute.xlu2 %1236 }
 0x32a   : > { %v1256_v50 = vsel %vm1254_vm10, %v1233_v16, %v1235_v62  ;;  %v1231_v46 = vpop.permute.xlu1 %1230 }
 0x32b   : > { %v1272_v35 = vsel %vm1171_vm2, %v1203_v42, %v1256_v50  ;;  %v1255_v26 = vsel %vm1254_vm10, %v1231_v46, %v1233_v16 }
 0x32c   : > { %v1287_v25 = vrot.slane %v1272_v35, 6  ;;  %v1271_v44 = vsel %vm1171_vm2, %v1202_v18, %v1255_v26 }
 0x32e   : > { %v1291_v48 = vsel %vm1188_vm3, %v1271_v44, %v1287_v25 }
 0x32f   : > { %1295 = vst [vmem:[#allocation1] ss:$4 sm:$0xff] %v1291_v48 }
 0x331   : > { %v1245_v6 = vpop.permute.xlu0 %1244 }
 0x332   : > { %v1239_v63 = vpop.permute.xlu1 %1238 }
 0x333   : > { %v1257_v1 = vsel %vm1254_vm10, %v1237_v55, %v1239_v63  ;;  %v1258_v2 = vsel %vm1254_vm10, %v1239_v63, %v1241_v14 }
 0x334   : > { %v1274_v9 = vsel %vm1171_vm2, %v1205_v57, %v1258_v2  ;;  %v1273_v58 = vsel %vm1171_vm2, %v1204_v8, %v1257_v1 }
 0x335   : > { %v1288_v3 = vrot.slane %v1274_v9, 6 }
 0x337   : > { %v1292_v5 = vsel %vm1188_vm3, %v1273_v58, %v1288_v3 }
 0x338   : > { %1297 = vst [vmem:[#allocation1 + $0x1] ss:$4 sm:$0xff] %v1292_v5 }
 0x339   : > { %v1253_v60 = vpop.permute.xlu0 %1252 }
 0x33a   : > { %v1247_v61 = vpop.permute.xlu1 %1246  ;;  %v1262_v31 = vsel %vm1254_vm10, %v1251_v39, %v1253_v60 }
 0x33b   : > { %v1260_v17 = vsel %vm1254_vm10, %v1245_v6, %v1247_v61  ;;  %v1278_v28 = vsel %vm1171_vm2, %v1209_v20, %v1262_v31 }
 0x33c   : > { %v1276_v29 = vsel %vm1171_vm2, %v1207_v19, %v1260_v17  ;;  %v1290_v56 = vrot.slane %v1278_v28, 6 }
 0x33d   : > { %v1289_v36 = vrot.slane %v1276_v29, 6 }
 0x341   : > { %v1243_v11 = vpop.permute.xlu0 %1242 }
 0x342   : > { %v1259_v54 = vsel %vm1254_vm10, %v1243_v11, %v1245_v6  ;;  %v1249_v34 = vpop.permute.xlu1 %1248 }
 0x343   : > { %v1275_v30 = vsel %vm1171_vm2, %v1206_v24, %v1259_v54  ;;  %v1261_v40 = vsel %vm1254_vm10, %v1249_v34, %v1251_v39 }
 0x344   : > { %v1293_v37 = vsel %vm1188_vm3, %v1275_v30, %v1289_v36  ;;  %v1277_v12 = vsel %vm1171_vm2, %v1208_v13, %v1261_v40 }
 0x345   : > { %1299 = vst [vmem:[#allocation1 + $0x2] ss:$4 sm:$0xff] %v1293_v37  ;;  %v1294_v0 = vsel %vm1188_vm3, %v1277_v12, %v1290_v56 }
 0x346   : > { %1301 = vst [vmem:[#allocation1 + $0x3] ss:$4 sm:$0xff] %v1294_v0 }
 0x34d   : > { %v1302_v51 = vld.sshfl [vmem:[#allocation1] sm:$0xff pattern:$0x73625140]  ;;  %v1303_v59 = vld.sshfl [vmem:[#allocation1 + $0x8] sm:$0xff pattern:$0x73625140] }
 0x34e   : > { %1306 = vst [vmem:[%s312_s27] sm:$0xff] %v1302_v51 }
 0x34f   : > { %1307 = vst [vmem:[%s312_s27 + $0x8] sm:$0xff] %v1303_v59 }
 0x350   : > { %1761 = shalt.err (!%p1758_p0)
}
 0x351   : > { %1485 = dma.vmem_to_hbm [thread:$0]  (%p1964_p2), %s1325_s26, 256, %s1327_s30, %s1309_s9  }
 0x352 PF: > { %s1338_s16 = sand.u32 1, %s1800_s18   ;;  %p1499_p4 = pnand %p1452_p8, %p1937_p5 }
 0x353   : > { %s1339_s24 = scalar_lea.sflag [#allocation4], %s1338_s16 }
 0x354   : > { %p1500_p6 = pneg %p1499_p4 }
 0x356   : > { %1795 = dma.done.wait (%p1500_p6), %s1339_s24, 256  }
 0x357   : > { %1797 = vsyncadd (%p1500_p6), %s1339_s24, 4294967040  ;;  %s22_s23 = sadd.s32 1, %s1820_s23   ;;  %s2518_s18 = smov %s1804_s19 }
 0x358   : > { %p19_p9 = scmp.ge.s32.totalorder %s22_s23, 4   ;;  %s2519_s19 = smov %s1808_s20 }
 0x359   : > { %s2520_s20 = smov %s1974_s6  ;;  %s2521_s21 = smov %s1816_s22 }
 0x35a   : > { %s2522_s22 = smov %s2524_s15  ;;  %21 = sbr.rel (!%p19_p9) target bundleno = 7 (0x7), region = 104 }
 0x35f   :  { %1345 = vsyncpa [#allocation3], 1 }
 0x360   :  { %1347 = vsyncpa [#allocation3 + $0x1], 1 }
 0x361   :  { %1348 = vsyncpa [#allocation6], 1 }
 0x362   :  { %1349 = vsyncpa [#allocation4], 1 }
 0x363   :  { %1351 = vsyncpa [#allocation4 + $0x1], 1 }

</bundles_post_ra>
